<compile_context>
chip_gen: v6e
topology: v6e:2x2x1
jax: 0.10.0
libtpu: 0.0.40
codegen_flags: <defaults>
</compile_context>

<pallas_src>
import math
from functools import partial

import jax
import jax.numpy as jnp
from jax.experimental import pallas as pl
from jax.experimental.pallas import tpu as pltpu


# ----------------------------- fused Pallas kernel --------------------------

def _layernorm(v, g, b, eps=1e-5):
    mu = jnp.mean(v, axis=-1, keepdims=True)
    var = jnp.mean((v - mu) ** 2, axis=-1, keepdims=True)
    return (v - mu) * jax.lax.rsqrt(var + eps) * g + b


def fused_transformer_kernel(src_ref, pe_ref, emb_w_ref, dec_w_ref, dec_b_ref,
                             *rest, num_layers, nhead, matmul_dtype):
    """One grid step == full forward pass for ONE sequence (grid over batch).

    Per-sequence attention needs no cross-batch mask; scores/probs are nhead x (S, S)
    instead of a (B*S, B*S) slab. All weights stay VMEM-resident across the grid
    (constant index_map), activations never leave the chip between stages.
    """
    o_ref = rest[-1]
    layer_refs = rest[:-1]
    f32 = jnp.float32
    md = matmul_dtype

    # ---- embedding + positional encoding (emb bias pre-folded into pe_ref) ----
    # nn.Dropout after positional encoding is identity in eval mode.
    # TODO(synk): if real inputs are one-hot k-mer tokens, pass int32 ids and gather
    # rows of emb_w instead of this depth-n_tokens matmul (saves src DMA + MXU pushes).
    x = jnp.dot(src_ref[...].astype(md), emb_w_ref[...],
                preferred_element_type=f32) + pe_ref[...]              # (S, D)
    S, D = x.shape
    dh = D // nhead

    # TODO(synk): for deep models, stack per-layer weights with a leading layer axis
    # and stream them via an "arbitrary" grid axis (double-buffered) instead of this
    # static unroll with all weights VMEM-resident.
    for li in range(num_layers):
        (w_qkv, b_qkv, wo, bo, g1, be1,
         w1, bf1, w2, bf2, g2, be2) = layer_refs[12 * li: 12 * (li + 1)]

        # Fused QKV: one MXU push with a lane-dense (S, 3D) result; 1/sqrt(dh) is
        # pre-folded into the Q columns / Q bias at wrapper time.
        qkv = jnp.dot(x.astype(md), w_qkv[...],
                      preferred_element_type=f32) + b_qkv[...]         # (S, 3D)
        q, k, v = qkv[:, 0:D], qkv[:, D:2 * D], qkv[:, 2 * D:3 * D]

        # TODO(synk): at large D, lay q/k/v out head-major via a batched dot_general so
        # per-head operands start at lane 0; at D=32 every slice is sub-128-lane anyway.
        head_outs = []
        for h in range(nhead):                                         # static unroll
            sl = slice(h * dh, (h + 1) * dh)
            qh, kh, vh = q[:, sl], k[:, sl], v[:, sl]
            s = jax.lax.dot_general(qh, kh, (((1,), (1,)), ((), ())),
                                    preferred_element_type=f32)        # (S, S)
            s = s - jnp.max(s, axis=-1, keepdims=True)
            p = jnp.exp(s)
            # TODO(synk): approx=True would move the divide to the EUP slot but risks
            # the 1e-4 reference tolerance; keep exact.
            p = p * pl.reciprocal(jnp.sum(p, axis=-1, keepdims=True), approx=False)
            head_outs.append(jnp.dot(p, vh, preferred_element_type=f32))

        # Single depth-D output projection (instead of nhead depth-dh contractions).
        o_cat = jnp.concatenate(head_outs, axis=-1)                    # (S, D)
        attn = jnp.dot(o_cat.astype(md), wo[...],
                       preferred_element_type=f32) + bo[...]

        x = _layernorm(x + attn, g1[...], be1[...])                    # post-norm #1
        h1 = jnp.maximum(
            jnp.dot(x.astype(md), w1[...], preferred_element_type=f32) + bf1[...], 0.0)
        h2 = jnp.dot(h1.astype(md), w2[...], preferred_element_type=f32) + bf2[...]
        x = _layernorm(x + h2, g2[...], be2[...])                      # post-norm #2

    # ---- last sequence position (single grid-local row slice) + decoder ----
    x_last = x[S - 1:S, :]                                             # (1, D)
    o_ref[...] = (jnp.dot(x_last.astype(md), dec_w_ref[...],
                          preferred_element_type=f32) + dec_b_ref[...])


# ----------------------------- wrapper ---------------------------------------

def prepare_kernel_params(params, *, seq, matmul_dtype=jnp.float32):
    """One-time layout prep: transpose PyTorch (out, in) weights to (in, out), fuse
    wq|wk|wv into one (D, 3D) matrix with the 1/sqrt(dh) scale folded into the Q part,
    and fold the embedding bias into the (S, D) positional-encoding slab."""
    nhead = params["nhead"]
    d_model = params["emb_w"].shape[0]
    dh = d_model // nhead
    scale = 1.0 / math.sqrt(dh)

    pe = params["pe"]
    assert seq <= pe.shape[0], (
        f"seq={seq} exceeds positional-encoding max_len={pe.shape[0]}")

    md = matmul_dtype
    pe_bias = (pe[:seq] + params["emb_b"]).astype(jnp.float32)         # (S, D)
    head_w = [pe_bias,
              params["emb_w"].T.astype(md),
              params["dec_w"].T.astype(md),
              params["dec_b"].astype(jnp.float32)]

    layer_w = []
    for lp in params["layers"]:
        w_qkv = jnp.concatenate([lp["wq"].T * scale, lp["wk"].T, lp["wv"].T], axis=1)
        b_qkv = jnp.concatenate([lp["bq"] * scale, lp["bk"], lp["bv"]], axis=1)
        layer_w += [
            w_qkv.astype(md), b_qkv.astype(jnp.float32),
            lp["wo"].T.astype(md), lp["bo"].astype(jnp.float32),
            lp["g1"], lp["be1"],
            lp["w1"].T.astype(md), lp["bf1"].astype(jnp.float32),
            lp["w2"].T.astype(md), lp["bf2"].astype(jnp.float32),
            lp["g2"], lp["be2"],
        ]

    return dict(head=head_w, layers=layer_w, nhead=nhead,
                num_layers=len(params["layers"]), matmul_dtype=md)


def transformer_classifier_forward(src, kparams):
    B, S, T = src.shape
    n_classes = kparams["head"][2].shape[-1]                   # dec_w.T is (D, C)

    weights = kparams["head"] + kparams["layers"]
    inputs = [src] + weights

    def resident_spec(w):
        # Full-array block with a constant index_map -> loaded once, stays in VMEM
        # across all grid iterations (no re-DMA).
        return pl.BlockSpec(w.shape, lambda b, _nd=w.ndim: (0,) * _nd)

    in_specs = ([pl.BlockSpec((None, S, T), lambda b: (b, 0, 0))]      # one sequence/step
                + [resident_spec(w) for w in weights])
    out_spec = pl.BlockSpec((None, 1, n_classes), lambda b: (b, 0, 0))

    kernel = partial(fused_transformer_kernel,
                     num_layers=kparams["num_layers"], nhead=kparams["nhead"],
                     matmul_dtype=kparams["matmul_dtype"])

    out = pl.pallas_call(
        kernel,
        out_shape=jax.ShapeDtypeStruct((B, 1, n_classes), jnp.float32),
        grid=(B,),
        in_specs=in_specs,
        out_specs=out_spec,
        compiler_params=pltpu.CompilerParams(
            dimension_semantics=("parallel",),      # batch shards across TCs (v7x)
            vmem_limit_bytes=32 << 20),             # re-derive if scaling on v7x (64 MiB phys)
    )(*inputs)
    return out.reshape(B, n_classes)


# ----------------------------- params / pos-encoding ------------------------

def make_positional_encoding(max_len, d_model):
    pos = jnp.arange(max_len, dtype=jnp.float32)[:, None]
    div = jnp.exp(jnp.arange(0, d_model, 2, dtype=jnp.float32)
                  * (-math.log(10000.0) / d_model))
    pe = jnp.zeros((max_len, d_model), dtype=jnp.float32)
    pe = pe.at[:, 0::2].set(jnp.sin(pos * div))
    pe = pe.at[:, 1::2].set(jnp.cos(pos * div))
    return pe                                                  # (max_len, d_model)


def init_params(key, *, n_tokens, n_classes, d_model, nhead,
                num_layers, dim_feedforward, max_len):
    # PyTorch layout (out, in) weights; the kernel wrapper re-lays them out once.
    def lin(k, out_dim, in_dim):
        kw, kb = jax.random.split(k)
        return (jax.random.normal(kw, (out_dim, in_dim), jnp.float32) * 0.05,
                jax.random.normal(kb, (1, out_dim), jnp.float32) * 0.05)

    keys = jax.random.split(key, 2 + num_layers)
    emb_w, emb_b = lin(keys[0], d_model, n_tokens)
    dec_w, dec_b = lin(keys[1], n_classes, d_model)

    layers = []
    for li in range(num_layers):
        lk = jax.random.split(keys[2 + li], 6)
        wq, bq = lin(lk[0], d_model, d_model)
        wk, bk = lin(lk[1], d_model, d_model)
        wv, bv = lin(lk[2], d_model, d_model)
        wo, bo = lin(lk[3], d_model, d_model)
        w1, bf1 = lin(lk[4], dim_feedforward, d_model)
        w2, bf2 = lin(lk[5], d_model, dim_feedforward)
        layers.append(dict(
            wq=wq, wk=wk, wv=wv, bq=bq, bk=bk, bv=bv, wo=wo, bo=bo,
            g1=jnp.ones((1, d_model), jnp.float32), be1=jnp.zeros((1, d_model), jnp.float32),
            w1=w1, bf1=bf1, w2=w2, bf2=bf2,
            g2=jnp.ones((1, d_model), jnp.float32), be2=jnp.zeros((1, d_model), jnp.float32),
        ))

    return dict(emb_w=emb_w, emb_b=emb_b, dec_w=dec_w, dec_b=dec_b,
                pe=make_positional_encoding(max_len, d_model),
                layers=layers, nhead=nhead)


# ----------------------------- pure-JAX reference ---------------------------

def _ln(x, g, b):
    mu = jnp.mean(x, axis=-1, keepdims=True)
    var = jnp.mean((x - mu) ** 2, axis=-1, keepdims=True)
    return (x - mu) * jax.lax.rsqrt(var + 1e-5) * g + b


def reference_forward(src, params):
    x = src @ params["emb_w"].T + params["emb_b"]
    S = x.shape[1]
    x = x + params["pe"][None, :S, :]
    nhead = params["nhead"]
    for lp in params["layers"]:
        B, S, D = x.shape
        dh = D // nhead
        q = (x @ lp["wq"].T + lp["bq"]).reshape(B, S, nhead, dh).transpose(0, 2, 1, 3)
        k = (x @ lp["wk"].T + lp["bk"]).reshape(B, S, nhead, dh).transpose(0, 2, 1, 3)
        v = (x @ lp["wv"].T + lp["bv"]).reshape(B, S, nhead, dh).transpose(0, 2, 1, 3)
        s = jnp.einsum("bhqd,bhkd->bhqk", q / math.sqrt(dh), k)
        p = jax.nn.softmax(s, axis=-1)
        o = jnp.einsum("bhqk,bhkd->bhqd", p, v).transpose(0, 2, 1, 3).reshape(B, S, D)
        o = o @ lp["wo"].T + lp["bo"]
        x = _ln(x + o, lp["g1"], lp["be1"])
        h = jnp.maximum(x @ lp["w1"].T + lp["bf1"], 0.0)
        h = h @ lp["w2"].T + lp["bf2"]
        x = _ln(x + h, lp["g2"], lp["be2"])
    return x[:, -1, :] @ params["dec_w"].T + params["dec_b"]


# --------------------------------- main -------------------------------------

if __name__ == "__main__":
    B, S = 2, 8                 # batch, seq (max_len == seq here)
    n_tokens = 16               # one-hot k-mer vocab (k=2 -> 16)
    d_model = 32
    nhead = 4
    num_layers = 2
    dim_feedforward = 64
    n_classes = 3

    key = jax.random.PRNGKey(0)
    k_param, k_src = jax.random.split(key)
    params = init_params(k_param, n_tokens=n_tokens, n_classes=n_classes,
                         d_model=d_model, nhead=nhead, num_layers=num_layers,
                         dim_feedforward=dim_feedforward, max_len=S)

    src = jax.random.normal(k_src, (B, S, n_tokens), jnp.float32)

    # matmul_dtype=jnp.bfloat16 is the production choice on v6e/v7x (halves weight
    # bytes, doubles MXU throughput); keep f32 here to hold the 1e-4 reference check.
    kparams = prepare_kernel_params(params, seq=S, matmul_dtype=jnp.float32)
    out = transformer_classifier_forward(src, kparams)
    out = jax.block_until_ready(out)

    ref = jax.block_until_ready(reference_forward(src, params))
    assert out.shape == (B, n_classes)
    assert jnp.allclose(out, ref, atol=1e-4, rtol=1e-4), (out, ref)

    print("KERNEL_OK")
</pallas_src>

<mosaic_0001>
module attributes {stable_mosaic.version = 11 : i64} {
  func.func @fused_transformer_kernel(%arg0: i32, %arg1: memref<1x8x16xf32, #tpu.memory_space<vmem>>, %arg2: memref<8x32xf32, #tpu.memory_space<vmem>>, %arg3: memref<16x32xf32, #tpu.memory_space<vmem>>, %arg4: memref<32x3xf32, #tpu.memory_space<vmem>>, %arg5: memref<1x3xf32, #tpu.memory_space<vmem>>, %arg6: memref<32x96xf32, #tpu.memory_space<vmem>>, %arg7: memref<1x96xf32, #tpu.memory_space<vmem>>, %arg8: memref<32x32xf32, #tpu.memory_space<vmem>>, %arg9: memref<1x32xf32, #tpu.memory_space<vmem>>, %arg10: memref<1x32xf32, #tpu.memory_space<vmem>>, %arg11: memref<1x32xf32, #tpu.memory_space<vmem>>, %arg12: memref<32x64xf32, #tpu.memory_space<vmem>>, %arg13: memref<1x64xf32, #tpu.memory_space<vmem>>, %arg14: memref<64x32xf32, #tpu.memory_space<vmem>>, %arg15: memref<1x32xf32, #tpu.memory_space<vmem>>, %arg16: memref<1x32xf32, #tpu.memory_space<vmem>>, %arg17: memref<1x32xf32, #tpu.memory_space<vmem>>, %arg18: memref<32x96xf32, #tpu.memory_space<vmem>>, %arg19: memref<1x96xf32, #tpu.memory_space<vmem>>, %arg20: memref<32x32xf32, #tpu.memory_space<vmem>>, %arg21: memref<1x32xf32, #tpu.memory_space<vmem>>, %arg22: memref<1x32xf32, #tpu.memory_space<vmem>>, %arg23: memref<1x32xf32, #tpu.memory_space<vmem>>, %arg24: memref<32x64xf32, #tpu.memory_space<vmem>>, %arg25: memref<1x64xf32, #tpu.memory_space<vmem>>, %arg26: memref<64x32xf32, #tpu.memory_space<vmem>>, %arg27: memref<1x32xf32, #tpu.memory_space<vmem>>, %arg28: memref<1x32xf32, #tpu.memory_space<vmem>>, %arg29: memref<1x32xf32, #tpu.memory_space<vmem>>, %arg30: memref<1x1x3xf32, #tpu.memory_space<vmem>>) attributes {dimension_semantics = [#tpu.dimension_semantics<parallel>], iteration_bounds = array<i64: 2>, scalar_prefetch = 0 : i64, scratch_operands = 0 : i64, tpu.core_type = #tpu.core_type<tc>, window_params = [{transform_indices = @transform_0, window_bounds = array<i64: 1, 8, 16>}, {pipeline_mode = #tpu.pipeline_mode<synchronous>, transform_indices = @transform_1, window_bounds = array<i64: 8, 32>}, {pipeline_mode = #tpu.pipeline_mode<synchronous>, transform_indices = @transform_2, window_bounds = array<i64: 16, 32>}, {pipeline_mode = #tpu.pipeline_mode<synchronous>, transform_indices = @transform_3, window_bounds = array<i64: 32, 3>}, {pipeline_mode = #tpu.pipeline_mode<synchronous>, transform_indices = @transform_4, window_bounds = array<i64: 1, 3>}, {pipeline_mode = #tpu.pipeline_mode<synchronous>, transform_indices = @transform_5, window_bounds = array<i64: 32, 96>}, {pipeline_mode = #tpu.pipeline_mode<synchronous>, transform_indices = @transform_6, window_bounds = array<i64: 1, 96>}, {pipeline_mode = #tpu.pipeline_mode<synchronous>, transform_indices = @transform_7, window_bounds = array<i64: 32, 32>}, {pipeline_mode = #tpu.pipeline_mode<synchronous>, transform_indices = @transform_8, window_bounds = array<i64: 1, 32>}, {pipeline_mode = #tpu.pipeline_mode<synchronous>, transform_indices = @transform_9, window_bounds = array<i64: 1, 32>}, {pipeline_mode = #tpu.pipeline_mode<synchronous>, transform_indices = @transform_10, window_bounds = array<i64: 1, 32>}, {pipeline_mode = #tpu.pipeline_mode<synchronous>, transform_indices = @transform_11, window_bounds = array<i64: 32, 64>}, {pipeline_mode = #tpu.pipeline_mode<synchronous>, transform_indices = @transform_12, window_bounds = array<i64: 1, 64>}, {pipeline_mode = #tpu.pipeline_mode<synchronous>, transform_indices = @transform_13, window_bounds = array<i64: 64, 32>}, {pipeline_mode = #tpu.pipeline_mode<synchronous>, transform_indices = @transform_14, window_bounds = array<i64: 1, 32>}, {pipeline_mode = #tpu.pipeline_mode<synchronous>, transform_indices = @transform_15, window_bounds = array<i64: 1, 32>}, {pipeline_mode = #tpu.pipeline_mode<synchronous>, transform_indices = @transform_16, window_bounds = array<i64: 1, 32>}, {pipeline_mode = #tpu.pipeline_mode<synchronous>, transform_indices = @transform_17, window_bounds = array<i64: 32, 96>}, {pipeline_mode = #tpu.pipeline_mode<synchronous>, transform_indices = @transform_18, window_bounds = array<i64: 1, 96>}, {pipeline_mode = #tpu.pipeline_mode<synchronous>, transform_indices = @transform_19, window_bounds = array<i64: 32, 32>}, {pipeline_mode = #tpu.pipeline_mode<synchronous>, transform_indices = @transform_20, window_bounds = array<i64: 1, 32>}, {pipeline_mode = #tpu.pipeline_mode<synchronous>, transform_indices = @transform_21, window_bounds = array<i64: 1, 32>}, {pipeline_mode = #tpu.pipeline_mode<synchronous>, transform_indices = @transform_22, window_bounds = array<i64: 1, 32>}, {pipeline_mode = #tpu.pipeline_mode<synchronous>, transform_indices = @transform_23, window_bounds = array<i64: 32, 64>}, {pipeline_mode = #tpu.pipeline_mode<synchronous>, transform_indices = @transform_24, window_bounds = array<i64: 1, 64>}, {pipeline_mode = #tpu.pipeline_mode<synchronous>, transform_indices = @transform_25, window_bounds = array<i64: 64, 32>}, {pipeline_mode = #tpu.pipeline_mode<synchronous>, transform_indices = @transform_26, window_bounds = array<i64: 1, 32>}, {pipeline_mode = #tpu.pipeline_mode<synchronous>, transform_indices = @transform_27, window_bounds = array<i64: 1, 32>}, {pipeline_mode = #tpu.pipeline_mode<synchronous>, transform_indices = @transform_28, window_bounds = array<i64: 1, 32>}, {transform_indices = @transform_29, window_bounds = array<i64: 1, 1, 3>}]} {
    %c0 = arith.constant 0 : index
    %c0_0 = arith.constant 0 : index
    %c0_1 = arith.constant 0 : index
    %0 = vector.load %arg1[%c0, %c0_0, %c0_1] : memref<1x8x16xf32, #tpu.memory_space<vmem>>, vector<1x8x16xf32>
    %1 = vector.shape_cast %0 : vector<1x8x16xf32> to vector<8x16xf32>
    %c0_2 = arith.constant 0 : index
    %c0_3 = arith.constant 0 : index
    %2 = vector.load %arg3[%c0_2, %c0_3] : memref<16x32xf32, #tpu.memory_space<vmem>>, vector<16x32xf32>
    %cst = arith.constant dense<0.000000e+00> : vector<8x32xf32>
    %3 = tpu.matmul %1, %2, %cst {dimension_numbers = #tpu.dot_dimension_numbers<[1], [0], [0], [1], [0, 0, 1, 1], [], []>} : vector<8x16xf32>, vector<16x32xf32>, vector<8x32xf32> -> vector<8x32xf32>
    %c0_4 = arith.constant 0 : index
    %c0_5 = arith.constant 0 : index
    %4 = vector.load %arg2[%c0_4, %c0_5] : memref<8x32xf32, #tpu.memory_space<vmem>>, vector<8x32xf32>
    %5 = arith.addf %3, %4 : vector<8x32xf32>
    %c0_6 = arith.constant 0 : index
    %c0_7 = arith.constant 0 : index
    %6 = vector.load %arg6[%c0_6, %c0_7] : memref<32x96xf32, #tpu.memory_space<vmem>>, vector<32x96xf32>
    %cst_8 = arith.constant dense<0.000000e+00> : vector<8x96xf32>
    %7 = tpu.matmul %5, %6, %cst_8 {dimension_numbers = #tpu.dot_dimension_numbers<[1], [0], [0], [1], [0, 0, 1, 1], [], []>} : vector<8x32xf32>, vector<32x96xf32>, vector<8x96xf32> -> vector<8x96xf32>
    %c0_9 = arith.constant 0 : index
    %c0_10 = arith.constant 0 : index
    %8 = vector.load %arg7[%c0_9, %c0_10] : memref<1x96xf32, #tpu.memory_space<vmem>>, vector<1x96xf32>
    %9 = vector.broadcast %8 : vector<1x96xf32> to vector<8x96xf32>
    %10 = arith.addf %7, %9 : vector<8x96xf32>
    %11 = vector.extract_strided_slice %10 {offsets = [0, 0], sizes = [8, 32], strides = [1, 1]} : vector<8x96xf32> to vector<8x32xf32>
    %12 = vector.extract_strided_slice %10 {offsets = [0, 32], sizes = [8, 32], strides = [1, 1]} : vector<8x96xf32> to vector<8x32xf32>
    %13 = vector.extract_strided_slice %10 {offsets = [0, 64], sizes = [8, 32], strides = [1, 1]} : vector<8x96xf32> to vector<8x32xf32>
    %14 = vector.extract_strided_slice %11 {offsets = [0, 0], sizes = [8, 8], strides = [1, 1]} : vector<8x32xf32> to vector<8x8xf32>
    %15 = vector.extract_strided_slice %12 {offsets = [0, 0], sizes = [8, 8], strides = [1, 1]} : vector<8x32xf32> to vector<8x8xf32>
    %16 = vector.extract_strided_slice %13 {offsets = [0, 0], sizes = [8, 8], strides = [1, 1]} : vector<8x32xf32> to vector<8x8xf32>
    %cst_11 = arith.constant dense<0.000000e+00> : vector<8x8xf32>
    %17 = tpu.matmul %14, %15, %cst_11 {dimension_numbers = #tpu.dot_dimension_numbers<[1], [1], [0], [0], [0, 0, 1, 0], [], []>} : vector<8x8xf32>, vector<8x8xf32>, vector<8x8xf32> -> vector<8x8xf32>
    %cst_12 = arith.constant dense<0xFF800000> : vector<8xf32>
    %18 = vector.multi_reduction <maximumf>, %17, %cst_12 [1] : vector<8x8xf32> to vector<8xf32>
    %19 = vector.shape_cast %18 : vector<8xf32> to vector<8x1xf32>
    %20 = vector.broadcast %19 : vector<8x1xf32> to vector<8x8xf32>
    %21 = arith.subf %17, %20 : vector<8x8xf32>
    %22 = math.exp %21 : vector<8x8xf32>
    %cst_13 = arith.constant dense<0.000000e+00> : vector<8xf32>
    %23 = vector.multi_reduction <add>, %22, %cst_13 [1] : vector<8x8xf32> to vector<8xf32>
    %24 = vector.shape_cast %23 : vector<8xf32> to vector<8x1xf32>
    %25 = tpu.reciprocal %24 : vector<8x1xf32> -> vector<8x1xf32>
    %26 = vector.broadcast %25 : vector<8x1xf32> to vector<8x8xf32>
    %27 = arith.mulf %22, %26 : vector<8x8xf32>
    %cst_14 = arith.constant dense<0.000000e+00> : vector<8x8xf32>
    %28 = tpu.matmul %27, %16, %cst_14 {dimension_numbers = #tpu.dot_dimension_numbers<[1], [0], [0], [1], [0, 0, 1, 1], [], []>} : vector<8x8xf32>, vector<8x8xf32>, vector<8x8xf32> -> vector<8x8xf32>
    %29 = vector.extract_strided_slice %11 {offsets = [0, 8], sizes = [8, 8], strides = [1, 1]} : vector<8x32xf32> to vector<8x8xf32>
    %30 = vector.extract_strided_slice %12 {offsets = [0, 8], sizes = [8, 8], strides = [1, 1]} : vector<8x32xf32> to vector<8x8xf32>
    %31 = vector.extract_strided_slice %13 {offsets = [0, 8], sizes = [8, 8], strides = [1, 1]} : vector<8x32xf32> to vector<8x8xf32>
    %cst_15 = arith.constant dense<0.000000e+00> : vector<8x8xf32>
    %32 = tpu.matmul %29, %30, %cst_15 {dimension_numbers = #tpu.dot_dimension_numbers<[1], [1], [0], [0], [0, 0, 1, 0], [], []>} : vector<8x8xf32>, vector<8x8xf32>, vector<8x8xf32> -> vector<8x8xf32>
    %cst_16 = arith.constant dense<0xFF800000> : vector<8xf32>
    %33 = vector.multi_reduction <maximumf>, %32, %cst_16 [1] : vector<8x8xf32> to vector<8xf32>
    %34 = vector.shape_cast %33 : vector<8xf32> to vector<8x1xf32>
    %35 = vector.broadcast %34 : vector<8x1xf32> to vector<8x8xf32>
    %36 = arith.subf %32, %35 : vector<8x8xf32>
    %37 = math.exp %36 : vector<8x8xf32>
    %cst_17 = arith.constant dense<0.000000e+00> : vector<8xf32>
    %38 = vector.multi_reduction <add>, %37, %cst_17 [1] : vector<8x8xf32> to vector<8xf32>
    %39 = vector.shape_cast %38 : vector<8xf32> to vector<8x1xf32>
    %40 = tpu.reciprocal %39 : vector<8x1xf32> -> vector<8x1xf32>
    %41 = vector.broadcast %40 : vector<8x1xf32> to vector<8x8xf32>
    %42 = arith.mulf %37, %41 : vector<8x8xf32>
    %cst_18 = arith.constant dense<0.000000e+00> : vector<8x8xf32>
    %43 = tpu.matmul %42, %31, %cst_18 {dimension_numbers = #tpu.dot_dimension_numbers<[1], [0], [0], [1], [0, 0, 1, 1], [], []>} : vector<8x8xf32>, vector<8x8xf32>, vector<8x8xf32> -> vector<8x8xf32>
    %44 = vector.extract_strided_slice %11 {offsets = [0, 16], sizes = [8, 8], strides = [1, 1]} : vector<8x32xf32> to vector<8x8xf32>
    %45 = vector.extract_strided_slice %12 {offsets = [0, 16], sizes = [8, 8], strides = [1, 1]} : vector<8x32xf32> to vector<8x8xf32>
    %46 = vector.extract_strided_slice %13 {offsets = [0, 16], sizes = [8, 8], strides = [1, 1]} : vector<8x32xf32> to vector<8x8xf32>
    %cst_19 = arith.constant dense<0.000000e+00> : vector<8x8xf32>
    %47 = tpu.matmul %44, %45, %cst_19 {dimension_numbers = #tpu.dot_dimension_numbers<[1], [1], [0], [0], [0, 0, 1, 0], [], []>} : vector<8x8xf32>, vector<8x8xf32>, vector<8x8xf32> -> vector<8x8xf32>
    %cst_20 = arith.constant dense<0xFF800000> : vector<8xf32>
    %48 = vector.multi_reduction <maximumf>, %47, %cst_20 [1] : vector<8x8xf32> to vector<8xf32>
    %49 = vector.shape_cast %48 : vector<8xf32> to vector<8x1xf32>
    %50 = vector.broadcast %49 : vector<8x1xf32> to vector<8x8xf32>
    %51 = arith.subf %47, %50 : vector<8x8xf32>
    %52 = math.exp %51 : vector<8x8xf32>
    %cst_21 = arith.constant dense<0.000000e+00> : vector<8xf32>
    %53 = vector.multi_reduction <add>, %52, %cst_21 [1] : vector<8x8xf32> to vector<8xf32>
    %54 = vector.shape_cast %53 : vector<8xf32> to vector<8x1xf32>
    %55 = tpu.reciprocal %54 : vector<8x1xf32> -> vector<8x1xf32>
    %56 = vector.broadcast %55 : vector<8x1xf32> to vector<8x8xf32>
    %57 = arith.mulf %52, %56 : vector<8x8xf32>
    %cst_22 = arith.constant dense<0.000000e+00> : vector<8x8xf32>
    %58 = tpu.matmul %57, %46, %cst_22 {dimension_numbers = #tpu.dot_dimension_numbers<[1], [0], [0], [1], [0, 0, 1, 1], [], []>} : vector<8x8xf32>, vector<8x8xf32>, vector<8x8xf32> -> vector<8x8xf32>
    %59 = vector.extract_strided_slice %11 {offsets = [0, 24], sizes = [8, 8], strides = [1, 1]} : vector<8x32xf32> to vector<8x8xf32>
    %60 = vector.extract_strided_slice %12 {offsets = [0, 24], sizes = [8, 8], strides = [1, 1]} : vector<8x32xf32> to vector<8x8xf32>
    %61 = vector.extract_strided_slice %13 {offsets = [0, 24], sizes = [8, 8], strides = [1, 1]} : vector<8x32xf32> to vector<8x8xf32>
    %cst_23 = arith.constant dense<0.000000e+00> : vector<8x8xf32>
    %62 = tpu.matmul %59, %60, %cst_23 {dimension_numbers = #tpu.dot_dimension_numbers<[1], [1], [0], [0], [0, 0, 1, 0], [], []>} : vector<8x8xf32>, vector<8x8xf32>, vector<8x8xf32> -> vector<8x8xf32>
    %cst_24 = arith.constant dense<0xFF800000> : vector<8xf32>
    %63 = vector.multi_reduction <maximumf>, %62, %cst_24 [1] : vector<8x8xf32> to vector<8xf32>
    %64 = vector.shape_cast %63 : vector<8xf32> to vector<8x1xf32>
    %65 = vector.broadcast %64 : vector<8x1xf32> to vector<8x8xf32>
    %66 = arith.subf %62, %65 : vector<8x8xf32>
    %67 = math.exp %66 : vector<8x8xf32>
    %cst_25 = arith.constant dense<0.000000e+00> : vector<8xf32>
    %68 = vector.multi_reduction <add>, %67, %cst_25 [1] : vector<8x8xf32> to vector<8xf32>
    %69 = vector.shape_cast %68 : vector<8xf32> to vector<8x1xf32>
    %70 = tpu.reciprocal %69 : vector<8x1xf32> -> vector<8x1xf32>
    %71 = vector.broadcast %70 : vector<8x1xf32> to vector<8x8xf32>
    %72 = arith.mulf %67, %71 : vector<8x8xf32>
    %cst_26 = arith.constant dense<0.000000e+00> : vector<8x8xf32>
    %73 = tpu.matmul %72, %61, %cst_26 {dimension_numbers = #tpu.dot_dimension_numbers<[1], [0], [0], [1], [0, 0, 1, 1], [], []>} : vector<8x8xf32>, vector<8x8xf32>, vector<8x8xf32> -> vector<8x8xf32>
    %74 = tpu.concatenate %28, %43, %58, %73 in 1 : vector<8x8xf32>, vector<8x8xf32>, vector<8x8xf32>, vector<8x8xf32> -> vector<8x32xf32>
    %c0_27 = arith.constant 0 : index
    %c0_28 = arith.constant 0 : index
    %75 = vector.load %arg8[%c0_27, %c0_28] : memref<32x32xf32, #tpu.memory_space<vmem>>, vector<32x32xf32>
    %cst_29 = arith.constant dense<0.000000e+00> : vector<8x32xf32>
    %76 = tpu.matmul %74, %75, %cst_29 {dimension_numbers = #tpu.dot_dimension_numbers<[1], [0], [0], [1], [0, 0, 1, 1], [], []>} : vector<8x32xf32>, vector<32x32xf32>, vector<8x32xf32> -> vector<8x32xf32>
    %c0_30 = arith.constant 0 : index
    %c0_31 = arith.constant 0 : index
    %77 = vector.load %arg9[%c0_30, %c0_31] : memref<1x32xf32, #tpu.memory_space<vmem>>, vector<1x32xf32>
    %78 = vector.broadcast %77 : vector<1x32xf32> to vector<8x32xf32>
    %79 = arith.addf %76, %78 : vector<8x32xf32>
    %80 = arith.addf %5, %79 : vector<8x32xf32>
    %c0_32 = arith.constant 0 : index
    %c0_33 = arith.constant 0 : index
    %81 = vector.load %arg10[%c0_32, %c0_33] : memref<1x32xf32, #tpu.memory_space<vmem>>, vector<1x32xf32>
    %c0_34 = arith.constant 0 : index
    %c0_35 = arith.constant 0 : index
    %82 = vector.load %arg11[%c0_34, %c0_35] : memref<1x32xf32, #tpu.memory_space<vmem>>, vector<1x32xf32>
    %cst_36 = arith.constant dense<0.000000e+00> : vector<8xf32>
    %83 = vector.multi_reduction <add>, %80, %cst_36 [1] : vector<8x32xf32> to vector<8xf32>
    %84 = vector.shape_cast %83 : vector<8xf32> to vector<8x1xf32>
    %cst_37 = arith.constant 3.200000e+01 : f32
    %85 = vector.broadcast %cst_37 : f32 to vector<8x1xf32>
    %86 = arith.divf %84, %85 : vector<8x1xf32>
    %87 = vector.broadcast %86 : vector<8x1xf32> to vector<8x32xf32>
    %88 = arith.subf %80, %87 : vector<8x32xf32>
    %89 = arith.mulf %88, %88 : vector<8x32xf32>
    %cst_38 = arith.constant dense<0.000000e+00> : vector<8xf32>
    %90 = vector.multi_reduction <add>, %89, %cst_38 [1] : vector<8x32xf32> to vector<8xf32>
    %91 = vector.shape_cast %90 : vector<8xf32> to vector<8x1xf32>
    %cst_39 = arith.constant 3.200000e+01 : f32
    %92 = vector.broadcast %cst_39 : f32 to vector<8x1xf32>
    %93 = arith.divf %91, %92 : vector<8x1xf32>
    %94 = vector.broadcast %86 : vector<8x1xf32> to vector<8x32xf32>
    %95 = arith.subf %80, %94 : vector<8x32xf32>
    %cst_40 = arith.constant 9.99999974E-6 : f32
    %96 = vector.broadcast %cst_40 : f32 to vector<8x1xf32>
    %97 = arith.addf %93, %96 : vector<8x1xf32>
    %98 = math.rsqrt %97 : vector<8x1xf32>
    %99 = vector.broadcast %98 : vector<8x1xf32> to vector<8x32xf32>
    %100 = arith.mulf %95, %99 : vector<8x32xf32>
    %101 = vector.broadcast %81 : vector<1x32xf32> to vector<8x32xf32>
    %102 = arith.mulf %100, %101 : vector<8x32xf32>
    %103 = vector.broadcast %82 : vector<1x32xf32> to vector<8x32xf32>
    %104 = arith.addf %102, %103 : vector<8x32xf32>
    %c0_41 = arith.constant 0 : index
    %c0_42 = arith.constant 0 : index
    %105 = vector.load %arg12[%c0_41, %c0_42] : memref<32x64xf32, #tpu.memory_space<vmem>>, vector<32x64xf32>
    %cst_43 = arith.constant dense<0.000000e+00> : vector<8x64xf32>
    %106 = tpu.matmul %104, %105, %cst_43 {dimension_numbers = #tpu.dot_dimension_numbers<[1], [0], [0], [1], [0, 0, 1, 1], [], []>} : vector<8x32xf32>, vector<32x64xf32>, vector<8x64xf32> -> vector<8x64xf32>
    %c0_44 = arith.constant 0 : index
    %c0_45 = arith.constant 0 : index
    %107 = vector.load %arg13[%c0_44, %c0_45] : memref<1x64xf32, #tpu.memory_space<vmem>>, vector<1x64xf32>
    %108 = vector.broadcast %107 : vector<1x64xf32> to vector<8x64xf32>
    %109 = arith.addf %106, %108 : vector<8x64xf32>
    %cst_46 = arith.constant 0.000000e+00 : f32
    %110 = vector.broadcast %cst_46 : f32 to vector<8x64xf32>
    %111 = arith.maximumf %109, %110 : vector<8x64xf32>
    %c0_47 = arith.constant 0 : index
    %c0_48 = arith.constant 0 : index
    %112 = vector.load %arg14[%c0_47, %c0_48] : memref<64x32xf32, #tpu.memory_space<vmem>>, vector<64x32xf32>
    %cst_49 = arith.constant dense<0.000000e+00> : vector<8x32xf32>
    %113 = tpu.matmul %111, %112, %cst_49 {dimension_numbers = #tpu.dot_dimension_numbers<[1], [0], [0], [1], [0, 0, 1, 1], [], []>} : vector<8x64xf32>, vector<64x32xf32>, vector<8x32xf32> -> vector<8x32xf32>
    %c0_50 = arith.constant 0 : index
    %c0_51 = arith.constant 0 : index
    %114 = vector.load %arg15[%c0_50, %c0_51] : memref<1x32xf32, #tpu.memory_space<vmem>>, vector<1x32xf32>
    %115 = vector.broadcast %114 : vector<1x32xf32> to vector<8x32xf32>
    %116 = arith.addf %113, %115 : vector<8x32xf32>
    %117 = arith.addf %104, %116 : vector<8x32xf32>
    %c0_52 = arith.constant 0 : index
    %c0_53 = arith.constant 0 : index
    %118 = vector.load %arg16[%c0_52, %c0_53] : memref<1x32xf32, #tpu.memory_space<vmem>>, vector<1x32xf32>
    %c0_54 = arith.constant 0 : index
    %c0_55 = arith.constant 0 : index
    %119 = vector.load %arg17[%c0_54, %c0_55] : memref<1x32xf32, #tpu.memory_space<vmem>>, vector<1x32xf32>
    %cst_56 = arith.constant dense<0.000000e+00> : vector<8xf32>
    %120 = vector.multi_reduction <add>, %117, %cst_56 [1] : vector<8x32xf32> to vector<8xf32>
    %121 = vector.shape_cast %120 : vector<8xf32> to vector<8x1xf32>
    %cst_57 = arith.constant 3.200000e+01 : f32
    %122 = vector.broadcast %cst_57 : f32 to vector<8x1xf32>
    %123 = arith.divf %121, %122 : vector<8x1xf32>
    %124 = vector.broadcast %123 : vector<8x1xf32> to vector<8x32xf32>
    %125 = arith.subf %117, %124 : vector<8x32xf32>
    %126 = arith.mulf %125, %125 : vector<8x32xf32>
    %cst_58 = arith.constant dense<0.000000e+00> : vector<8xf32>
    %127 = vector.multi_reduction <add>, %126, %cst_58 [1] : vector<8x32xf32> to vector<8xf32>
    %128 = vector.shape_cast %127 : vector<8xf32> to vector<8x1xf32>
    %cst_59 = arith.constant 3.200000e+01 : f32
    %129 = vector.broadcast %cst_59 : f32 to vector<8x1xf32>
    %130 = arith.divf %128, %129 : vector<8x1xf32>
    %131 = vector.broadcast %123 : vector<8x1xf32> to vector<8x32xf32>
    %132 = arith.subf %117, %131 : vector<8x32xf32>
    %cst_60 = arith.constant 9.99999974E-6 : f32
    %133 = vector.broadcast %cst_60 : f32 to vector<8x1xf32>
    %134 = arith.addf %130, %133 : vector<8x1xf32>
    %135 = math.rsqrt %134 : vector<8x1xf32>
    %136 = vector.broadcast %135 : vector<8x1xf32> to vector<8x32xf32>
    %137 = arith.mulf %132, %136 : vector<8x32xf32>
    %138 = vector.broadcast %118 : vector<1x32xf32> to vector<8x32xf32>
    %139 = arith.mulf %137, %138 : vector<8x32xf32>
    %140 = vector.broadcast %119 : vector<1x32xf32> to vector<8x32xf32>
    %141 = arith.addf %139, %140 : vector<8x32xf32>
    %c0_61 = arith.constant 0 : index
    %c0_62 = arith.constant 0 : index
    %142 = vector.load %arg18[%c0_61, %c0_62] : memref<32x96xf32, #tpu.memory_space<vmem>>, vector<32x96xf32>
    %cst_63 = arith.constant dense<0.000000e+00> : vector<8x96xf32>
    %143 = tpu.matmul %141, %142, %cst_63 {dimension_numbers = #tpu.dot_dimension_numbers<[1], [0], [0], [1], [0, 0, 1, 1], [], []>} : vector<8x32xf32>, vector<32x96xf32>, vector<8x96xf32> -> vector<8x96xf32>
    %c0_64 = arith.constant 0 : index
    %c0_65 = arith.constant 0 : index
    %144 = vector.load %arg19[%c0_64, %c0_65] : memref<1x96xf32, #tpu.memory_space<vmem>>, vector<1x96xf32>
    %145 = vector.broadcast %144 : vector<1x96xf32> to vector<8x96xf32>
    %146 = arith.addf %143, %145 : vector<8x96xf32>
    %147 = vector.extract_strided_slice %146 {offsets = [0, 0], sizes = [8, 32], strides = [1, 1]} : vector<8x96xf32> to vector<8x32xf32>
    %148 = vector.extract_strided_slice %146 {offsets = [0, 32], sizes = [8, 32], strides = [1, 1]} : vector<8x96xf32> to vector<8x32xf32>
    %149 = vector.extract_strided_slice %146 {offsets = [0, 64], sizes = [8, 32], strides = [1, 1]} : vector<8x96xf32> to vector<8x32xf32>
    %150 = vector.extract_strided_slice %147 {offsets = [0, 0], sizes = [8, 8], strides = [1, 1]} : vector<8x32xf32> to vector<8x8xf32>
    %151 = vector.extract_strided_slice %148 {offsets = [0, 0], sizes = [8, 8], strides = [1, 1]} : vector<8x32xf32> to vector<8x8xf32>
    %152 = vector.extract_strided_slice %149 {offsets = [0, 0], sizes = [8, 8], strides = [1, 1]} : vector<8x32xf32> to vector<8x8xf32>
    %cst_66 = arith.constant dense<0.000000e+00> : vector<8x8xf32>
    %153 = tpu.matmul %150, %151, %cst_66 {dimension_numbers = #tpu.dot_dimension_numbers<[1], [1], [0], [0], [0, 0, 1, 0], [], []>} : vector<8x8xf32>, vector<8x8xf32>, vector<8x8xf32> -> vector<8x8xf32>
    %cst_67 = arith.constant dense<0xFF800000> : vector<8xf32>
    %154 = vector.multi_reduction <maximumf>, %153, %cst_67 [1] : vector<8x8xf32> to vector<8xf32>
    %155 = vector.shape_cast %154 : vector<8xf32> to vector<8x1xf32>
    %156 = vector.broadcast %155 : vector<8x1xf32> to vector<8x8xf32>
    %157 = arith.subf %153, %156 : vector<8x8xf32>
    %158 = math.exp %157 : vector<8x8xf32>
    %cst_68 = arith.constant dense<0.000000e+00> : vector<8xf32>
    %159 = vector.multi_reduction <add>, %158, %cst_68 [1] : vector<8x8xf32> to vector<8xf32>
    %160 = vector.shape_cast %159 : vector<8xf32> to vector<8x1xf32>
    %161 = tpu.reciprocal %160 : vector<8x1xf32> -> vector<8x1xf32>
    %162 = vector.broadcast %161 : vector<8x1xf32> to vector<8x8xf32>
    %163 = arith.mulf %158, %162 : vector<8x8xf32>
    %cst_69 = arith.constant dense<0.000000e+00> : vector<8x8xf32>
    %164 = tpu.matmul %163, %152, %cst_69 {dimension_numbers = #tpu.dot_dimension_numbers<[1], [0], [0], [1], [0, 0, 1, 1], [], []>} : vector<8x8xf32>, vector<8x8xf32>, vector<8x8xf32> -> vector<8x8xf32>
    %165 = vector.extract_strided_slice %147 {offsets = [0, 8], sizes = [8, 8], strides = [1, 1]} : vector<8x32xf32> to vector<8x8xf32>
    %166 = vector.extract_strided_slice %148 {offsets = [0, 8], sizes = [8, 8], strides = [1, 1]} : vector<8x32xf32> to vector<8x8xf32>
    %167 = vector.extract_strided_slice %149 {offsets = [0, 8], sizes = [8, 8], strides = [1, 1]} : vector<8x32xf32> to vector<8x8xf32>
    %cst_70 = arith.constant dense<0.000000e+00> : vector<8x8xf32>
    %168 = tpu.matmul %165, %166, %cst_70 {dimension_numbers = #tpu.dot_dimension_numbers<[1], [1], [0], [0], [0, 0, 1, 0], [], []>} : vector<8x8xf32>, vector<8x8xf32>, vector<8x8xf32> -> vector<8x8xf32>
    %cst_71 = arith.constant dense<0xFF800000> : vector<8xf32>
    %169 = vector.multi_reduction <maximumf>, %168, %cst_71 [1] : vector<8x8xf32> to vector<8xf32>
    %170 = vector.shape_cast %169 : vector<8xf32> to vector<8x1xf32>
    %171 = vector.broadcast %170 : vector<8x1xf32> to vector<8x8xf32>
    %172 = arith.subf %168, %171 : vector<8x8xf32>
    %173 = math.exp %172 : vector<8x8xf32>
    %cst_72 = arith.constant dense<0.000000e+00> : vector<8xf32>
    %174 = vector.multi_reduction <add>, %173, %cst_72 [1] : vector<8x8xf32> to vector<8xf32>
    %175 = vector.shape_cast %174 : vector<8xf32> to vector<8x1xf32>
    %176 = tpu.reciprocal %175 : vector<8x1xf32> -> vector<8x1xf32>
    %177 = vector.broadcast %176 : vector<8x1xf32> to vector<8x8xf32>
    %178 = arith.mulf %173, %177 : vector<8x8xf32>
    %cst_73 = arith.constant dense<0.000000e+00> : vector<8x8xf32>
    %179 = tpu.matmul %178, %167, %cst_73 {dimension_numbers = #tpu.dot_dimension_numbers<[1], [0], [0], [1], [0, 0, 1, 1], [], []>} : vector<8x8xf32>, vector<8x8xf32>, vector<8x8xf32> -> vector<8x8xf32>
    %180 = vector.extract_strided_slice %147 {offsets = [0, 16], sizes = [8, 8], strides = [1, 1]} : vector<8x32xf32> to vector<8x8xf32>
    %181 = vector.extract_strided_slice %148 {offsets = [0, 16], sizes = [8, 8], strides = [1, 1]} : vector<8x32xf32> to vector<8x8xf32>
    %182 = vector.extract_strided_slice %149 {offsets = [0, 16], sizes = [8, 8], strides = [1, 1]} : vector<8x32xf32> to vector<8x8xf32>
    %cst_74 = arith.constant dense<0.000000e+00> : vector<8x8xf32>
    %183 = tpu.matmul %180, %181, %cst_74 {dimension_numbers = #tpu.dot_dimension_numbers<[1], [1], [0], [0], [0, 0, 1, 0], [], []>} : vector<8x8xf32>, vector<8x8xf32>, vector<8x8xf32> -> vector<8x8xf32>
    %cst_75 = arith.constant dense<0xFF800000> : vector<8xf32>
    %184 = vector.multi_reduction <maximumf>, %183, %cst_75 [1] : vector<8x8xf32> to vector<8xf32>
    %185 = vector.shape_cast %184 : vector<8xf32> to vector<8x1xf32>
    %186 = vector.broadcast %185 : vector<8x1xf32> to vector<8x8xf32>
    %187 = arith.subf %183, %186 : vector<8x8xf32>
    %188 = math.exp %187 : vector<8x8xf32>
    %cst_76 = arith.constant dense<0.000000e+00> : vector<8xf32>
    %189 = vector.multi_reduction <add>, %188, %cst_76 [1] : vector<8x8xf32> to vector<8xf32>
    %190 = vector.shape_cast %189 : vector<8xf32> to vector<8x1xf32>
    %191 = tpu.reciprocal %190 : vector<8x1xf32> -> vector<8x1xf32>
    %192 = vector.broadcast %191 : vector<8x1xf32> to vector<8x8xf32>
    %193 = arith.mulf %188, %192 : vector<8x8xf32>
    %cst_77 = arith.constant dense<0.000000e+00> : vector<8x8xf32>
    %194 = tpu.matmul %193, %182, %cst_77 {dimension_numbers = #tpu.dot_dimension_numbers<[1], [0], [0], [1], [0, 0, 1, 1], [], []>} : vector<8x8xf32>, vector<8x8xf32>, vector<8x8xf32> -> vector<8x8xf32>
    %195 = vector.extract_strided_slice %147 {offsets = [0, 24], sizes = [8, 8], strides = [1, 1]} : vector<8x32xf32> to vector<8x8xf32>
    %196 = vector.extract_strided_slice %148 {offsets = [0, 24], sizes = [8, 8], strides = [1, 1]} : vector<8x32xf32> to vector<8x8xf32>
    %197 = vector.extract_strided_slice %149 {offsets = [0, 24], sizes = [8, 8], strides = [1, 1]} : vector<8x32xf32> to vector<8x8xf32>
    %cst_78 = arith.constant dense<0.000000e+00> : vector<8x8xf32>
    %198 = tpu.matmul %195, %196, %cst_78 {dimension_numbers = #tpu.dot_dimension_numbers<[1], [1], [0], [0], [0, 0, 1, 0], [], []>} : vector<8x8xf32>, vector<8x8xf32>, vector<8x8xf32> -> vector<8x8xf32>
    %cst_79 = arith.constant dense<0xFF800000> : vector<8xf32>
    %199 = vector.multi_reduction <maximumf>, %198, %cst_79 [1] : vector<8x8xf32> to vector<8xf32>
    %200 = vector.shape_cast %199 : vector<8xf32> to vector<8x1xf32>
    %201 = vector.broadcast %200 : vector<8x1xf32> to vector<8x8xf32>
    %202 = arith.subf %198, %201 : vector<8x8xf32>
    %203 = math.exp %202 : vector<8x8xf32>
    %cst_80 = arith.constant dense<0.000000e+00> : vector<8xf32>
    %204 = vector.multi_reduction <add>, %203, %cst_80 [1] : vector<8x8xf32> to vector<8xf32>
    %205 = vector.shape_cast %204 : vector<8xf32> to vector<8x1xf32>
    %206 = tpu.reciprocal %205 : vector<8x1xf32> -> vector<8x1xf32>
    %207 = vector.broadcast %206 : vector<8x1xf32> to vector<8x8xf32>
    %208 = arith.mulf %203, %207 : vector<8x8xf32>
    %cst_81 = arith.constant dense<0.000000e+00> : vector<8x8xf32>
    %209 = tpu.matmul %208, %197, %cst_81 {dimension_numbers = #tpu.dot_dimension_numbers<[1], [0], [0], [1], [0, 0, 1, 1], [], []>} : vector<8x8xf32>, vector<8x8xf32>, vector<8x8xf32> -> vector<8x8xf32>
    %210 = tpu.concatenate %164, %179, %194, %209 in 1 : vector<8x8xf32>, vector<8x8xf32>, vector<8x8xf32>, vector<8x8xf32> -> vector<8x32xf32>
    %c0_82 = arith.constant 0 : index
    %c0_83 = arith.constant 0 : index
    %211 = vector.load %arg20[%c0_82, %c0_83] : memref<32x32xf32, #tpu.memory_space<vmem>>, vector<32x32xf32>
    %cst_84 = arith.constant dense<0.000000e+00> : vector<8x32xf32>
    %212 = tpu.matmul %210, %211, %cst_84 {dimension_numbers = #tpu.dot_dimension_numbers<[1], [0], [0], [1], [0, 0, 1, 1], [], []>} : vector<8x32xf32>, vector<32x32xf32>, vector<8x32xf32> -> vector<8x32xf32>
    %c0_85 = arith.constant 0 : index
    %c0_86 = arith.constant 0 : index
    %213 = vector.load %arg21[%c0_85, %c0_86] : memref<1x32xf32, #tpu.memory_space<vmem>>, vector<1x32xf32>
    %214 = vector.broadcast %213 : vector<1x32xf32> to vector<8x32xf32>
    %215 = arith.addf %212, %214 : vector<8x32xf32>
    %216 = arith.addf %141, %215 : vector<8x32xf32>
    %c0_87 = arith.constant 0 : index
    %c0_88 = arith.constant 0 : index
    %217 = vector.load %arg22[%c0_87, %c0_88] : memref<1x32xf32, #tpu.memory_space<vmem>>, vector<1x32xf32>
    %c0_89 = arith.constant 0 : index
    %c0_90 = arith.constant 0 : index
    %218 = vector.load %arg23[%c0_89, %c0_90] : memref<1x32xf32, #tpu.memory_space<vmem>>, vector<1x32xf32>
    %cst_91 = arith.constant dense<0.000000e+00> : vector<8xf32>
    %219 = vector.multi_reduction <add>, %216, %cst_91 [1] : vector<8x32xf32> to vector<8xf32>
    %220 = vector.shape_cast %219 : vector<8xf32> to vector<8x1xf32>
    %cst_92 = arith.constant 3.200000e+01 : f32
    %221 = vector.broadcast %cst_92 : f32 to vector<8x1xf32>
    %222 = arith.divf %220, %221 : vector<8x1xf32>
    %223 = vector.broadcast %222 : vector<8x1xf32> to vector<8x32xf32>
    %224 = arith.subf %216, %223 : vector<8x32xf32>
    %225 = arith.mulf %224, %224 : vector<8x32xf32>
    %cst_93 = arith.constant dense<0.000000e+00> : vector<8xf32>
    %226 = vector.multi_reduction <add>, %225, %cst_93 [1] : vector<8x32xf32> to vector<8xf32>
    %227 = vector.shape_cast %226 : vector<8xf32> to vector<8x1xf32>
    %cst_94 = arith.constant 3.200000e+01 : f32
    %228 = vector.broadcast %cst_94 : f32 to vector<8x1xf32>
    %229 = arith.divf %227, %228 : vector<8x1xf32>
    %230 = vector.broadcast %222 : vector<8x1xf32> to vector<8x32xf32>
    %231 = arith.subf %216, %230 : vector<8x32xf32>
    %cst_95 = arith.constant 9.99999974E-6 : f32
    %232 = vector.broadcast %cst_95 : f32 to vector<8x1xf32>
    %233 = arith.addf %229, %232 : vector<8x1xf32>
    %234 = math.rsqrt %233 : vector<8x1xf32>
    %235 = vector.broadcast %234 : vector<8x1xf32> to vector<8x32xf32>
    %236 = arith.mulf %231, %235 : vector<8x32xf32>
    %237 = vector.broadcast %217 : vector<1x32xf32> to vector<8x32xf32>
    %238 = arith.mulf %236, %237 : vector<8x32xf32>
    %239 = vector.broadcast %218 : vector<1x32xf32> to vector<8x32xf32>
    %240 = arith.addf %238, %239 : vector<8x32xf32>
    %c0_96 = arith.constant 0 : index
    %c0_97 = arith.constant 0 : index
    %241 = vector.load %arg24[%c0_96, %c0_97] : memref<32x64xf32, #tpu.memory_space<vmem>>, vector<32x64xf32>
    %cst_98 = arith.constant dense<0.000000e+00> : vector<8x64xf32>
    %242 = tpu.matmul %240, %241, %cst_98 {dimension_numbers = #tpu.dot_dimension_numbers<[1], [0], [0], [1], [0, 0, 1, 1], [], []>} : vector<8x32xf32>, vector<32x64xf32>, vector<8x64xf32> -> vector<8x64xf32>
    %c0_99 = arith.constant 0 : index
    %c0_100 = arith.constant 0 : index
    %243 = vector.load %arg25[%c0_99, %c0_100] : memref<1x64xf32, #tpu.memory_space<vmem>>, vector<1x64xf32>
    %244 = vector.broadcast %243 : vector<1x64xf32> to vector<8x64xf32>
    %245 = arith.addf %242, %244 : vector<8x64xf32>
    %cst_101 = arith.constant 0.000000e+00 : f32
    %246 = vector.broadcast %cst_101 : f32 to vector<8x64xf32>
    %247 = arith.maximumf %245, %246 : vector<8x64xf32>
    %c0_102 = arith.constant 0 : index
    %c0_103 = arith.constant 0 : index
    %248 = vector.load %arg26[%c0_102, %c0_103] : memref<64x32xf32, #tpu.memory_space<vmem>>, vector<64x32xf32>
    %cst_104 = arith.constant dense<0.000000e+00> : vector<8x32xf32>
    %249 = tpu.matmul %247, %248, %cst_104 {dimension_numbers = #tpu.dot_dimension_numbers<[1], [0], [0], [1], [0, 0, 1, 1], [], []>} : vector<8x64xf32>, vector<64x32xf32>, vector<8x32xf32> -> vector<8x32xf32>
    %c0_105 = arith.constant 0 : index
    %c0_106 = arith.constant 0 : index
    %250 = vector.load %arg27[%c0_105, %c0_106] : memref<1x32xf32, #tpu.memory_space<vmem>>, vector<1x32xf32>
    %251 = vector.broadcast %250 : vector<1x32xf32> to vector<8x32xf32>
    %252 = arith.addf %249, %251 : vector<8x32xf32>
    %253 = arith.addf %240, %252 : vector<8x32xf32>
    %c0_107 = arith.constant 0 : index
    %c0_108 = arith.constant 0 : index
    %254 = vector.load %arg28[%c0_107, %c0_108] : memref<1x32xf32, #tpu.memory_space<vmem>>, vector<1x32xf32>
    %c0_109 = arith.constant 0 : index
    %c0_110 = arith.constant 0 : index
    %255 = vector.load %arg29[%c0_109, %c0_110] : memref<1x32xf32, #tpu.memory_space<vmem>>, vector<1x32xf32>
    %cst_111 = arith.constant dense<0.000000e+00> : vector<8xf32>
    %256 = vector.multi_reduction <add>, %253, %cst_111 [1] : vector<8x32xf32> to vector<8xf32>
    %257 = vector.shape_cast %256 : vector<8xf32> to vector<8x1xf32>
    %cst_112 = arith.constant 3.200000e+01 : f32
    %258 = vector.broadcast %cst_112 : f32 to vector<8x1xf32>
    %259 = arith.divf %257, %258 : vector<8x1xf32>
    %260 = vector.broadcast %259 : vector<8x1xf32> to vector<8x32xf32>
    %261 = arith.subf %253, %260 : vector<8x32xf32>
    %262 = arith.mulf %261, %261 : vector<8x32xf32>
    %cst_113 = arith.constant dense<0.000000e+00> : vector<8xf32>
    %263 = vector.multi_reduction <add>, %262, %cst_113 [1] : vector<8x32xf32> to vector<8xf32>
    %264 = vector.shape_cast %263 : vector<8xf32> to vector<8x1xf32>
    %cst_114 = arith.constant 3.200000e+01 : f32
    %265 = vector.broadcast %cst_114 : f32 to vector<8x1xf32>
    %266 = arith.divf %264, %265 : vector<8x1xf32>
    %267 = vector.broadcast %259 : vector<8x1xf32> to vector<8x32xf32>
    %268 = arith.subf %253, %267 : vector<8x32xf32>
    %cst_115 = arith.constant 9.99999974E-6 : f32
    %269 = vector.broadcast %cst_115 : f32 to vector<8x1xf32>
    %270 = arith.addf %266, %269 : vector<8x1xf32>
    %271 = math.rsqrt %270 : vector<8x1xf32>
    %272 = vector.broadcast %271 : vector<8x1xf32> to vector<8x32xf32>
    %273 = arith.mulf %268, %272 : vector<8x32xf32>
    %274 = vector.broadcast %254 : vector<1x32xf32> to vector<8x32xf32>
    %275 = arith.mulf %273, %274 : vector<8x32xf32>
    %276 = vector.broadcast %255 : vector<1x32xf32> to vector<8x32xf32>
    %277 = arith.addf %275, %276 : vector<8x32xf32>
    %278 = vector.extract_strided_slice %277 {offsets = [7, 0], sizes = [1, 32], strides = [1, 1]} : vector<8x32xf32> to vector<1x32xf32>
    %c0_116 = arith.constant 0 : index
    %c0_117 = arith.constant 0 : index
    %279 = vector.load %arg4[%c0_116, %c0_117] : memref<32x3xf32, #tpu.memory_space<vmem>>, vector<32x3xf32>
    %cst_118 = arith.constant dense<0.000000e+00> : vector<1x3xf32>
    %280 = tpu.matmul %278, %279, %cst_118 {dimension_numbers = #tpu.dot_dimension_numbers<[1], [0], [0], [1], [0, 0, 1, 1], [], []>} : vector<1x32xf32>, vector<32x3xf32>, vector<1x3xf32> -> vector<1x3xf32>
    %c0_119 = arith.constant 0 : index
    %c0_120 = arith.constant 0 : index
    %281 = vector.load %arg5[%c0_119, %c0_120] : memref<1x3xf32, #tpu.memory_space<vmem>>, vector<1x3xf32>
    %282 = arith.addf %280, %281 : vector<1x3xf32>
    %c0_121 = arith.constant 0 : index
    %c0_122 = arith.constant 0 : index
    %c0_123 = arith.constant 0 : index
    %283 = vector.load %arg30[%c0_121, %c0_122, %c0_123] : memref<1x1x3xf32, #tpu.memory_space<vmem>>, vector<1x1x3xf32>
    %284 = vector.shape_cast %283 : vector<1x1x3xf32> to vector<1x3xf32>
    %285 = vector.shape_cast %282 : vector<1x3xf32> to vector<1x1x3xf32>
    tpu.vector_store %arg30[%c0_121, %c0_122, %c0_123], %285 {strides = array<i32>} : memref<1x1x3xf32, #tpu.memory_space<vmem>>, vector<1x1x3xf32>,
    return
  }
  func.func @transform_0(%arg0: i32) -> (i32, i32, i32) {
    %c0_i32 = arith.constant 0 : i32
    %c0_i32_0 = arith.constant 0 : i32
    %c0_i32_1 = arith.constant 0 : i32
    return %arg0, %c0_i32, %c0_i32_0 : i32, i32, i32
  }
  func.func @transform_1(%arg0: i32) -> (i32, i32) {
    %c0_i32 = arith.constant 0 : i32
    %c0_i32_0 = arith.constant 0 : i32
    %c0_i32_1 = arith.constant 0 : i32
    return %c0_i32, %c0_i32_0 : i32, i32
  }
  func.func @transform_2(%arg0: i32) -> (i32, i32) {
    %c0_i32 = arith.constant 0 : i32
    %c0_i32_0 = arith.constant 0 : i32
    %c0_i32_1 = arith.constant 0 : i32
    return %c0_i32, %c0_i32_0 : i32, i32
  }
  func.func @transform_3(%arg0: i32) -> (i32, i32) {
    %c0_i32 = arith.constant 0 : i32
    %c0_i32_0 = arith.constant 0 : i32
    %c0_i32_1 = arith.constant 0 : i32
    return %c0_i32, %c0_i32_0 : i32, i32
  }
  func.func @transform_4(%arg0: i32) -> (i32, i32) {
    %c0_i32 = arith.constant 0 : i32
    %c0_i32_0 = arith.constant 0 : i32
    %c0_i32_1 = arith.constant 0 : i32
    return %c0_i32, %c0_i32_0 : i32, i32
  }
  func.func @transform_5(%arg0: i32) -> (i32, i32) {
    %c0_i32 = arith.constant 0 : i32
    %c0_i32_0 = arith.constant 0 : i32
    %c0_i32_1 = arith.constant 0 : i32
    return %c0_i32, %c0_i32_0 : i32, i32
  }
  func.func @transform_6(%arg0: i32) -> (i32, i32) {
    %c0_i32 = arith.constant 0 : i32
    %c0_i32_0 = arith.constant 0 : i32
    %c0_i32_1 = arith.constant 0 : i32
    return %c0_i32, %c0_i32_0 : i32, i32
  }
  func.func @transform_7(%arg0: i32) -> (i32, i32) {
    %c0_i32 = arith.constant 0 : i32
    %c0_i32_0 = arith.constant 0 : i32
    %c0_i32_1 = arith.constant 0 : i32
    return %c0_i32, %c0_i32_0 : i32, i32
  }
  func.func @transform_8(%arg0: i32) -> (i32, i32) {
    %c0_i32 = arith.constant 0 : i32
    %c0_i32_0 = arith.constant 0 : i32
    %c0_i32_1 = arith.constant 0 : i32
    return %c0_i32, %c0_i32_0 : i32, i32
  }
  func.func @transform_9(%arg0: i32) -> (i32, i32) {
    %c0_i32 = arith.constant 0 : i32
    %c0_i32_0 = arith.constant 0 : i32
    %c0_i32_1 = arith.constant 0 : i32
    return %c0_i32, %c0_i32_0 : i32, i32
  }
  func.func @transform_10(%arg0: i32) -> (i32, i32) {
    %c0_i32 = arith.constant 0 : i32
    %c0_i32_0 = arith.constant 0 : i32
    %c0_i32_1 = arith.constant 0 : i32
    return %c0_i32, %c0_i32_0 : i32, i32
  }
  func.func @transform_11(%arg0: i32) -> (i32, i32) {
    %c0_i32 = arith.constant 0 : i32
    %c0_i32_0 = arith.constant 0 : i32
    %c0_i32_1 = arith.constant 0 : i32
    return %c0_i32, %c0_i32_0 : i32, i32
  }
  func.func @transform_12(%arg0: i32) -> (i32, i32) {
    %c0_i32 = arith.constant 0 : i32
    %c0_i32_0 = arith.constant 0 : i32
    %c0_i32_1 = arith.constant 0 : i32
    return %c0_i32, %c0_i32_0 : i32, i32
  }
  func.func @transform_13(%arg0: i32) -> (i32, i32) {
    %c0_i32 = arith.constant 0 : i32
    %c0_i32_0 = arith.constant 0 : i32
    %c0_i32_1 = arith.constant 0 : i32
    return %c0_i32, %c0_i32_0 : i32, i32
  }
  func.func @transform_14(%arg0: i32) -> (i32, i32) {
    %c0_i32 = arith.constant 0 : i32
    %c0_i32_0 = arith.constant 0 : i32
    %c0_i32_1 = arith.constant 0 : i32
    return %c0_i32, %c0_i32_0 : i32, i32
  }
  func.func @transform_15(%arg0: i32) -> (i32, i32) {
    %c0_i32 = arith.constant 0 : i32
    %c0_i32_0 = arith.constant 0 : i32
    %c0_i32_1 = arith.constant 0 : i32
    return %c0_i32, %c0_i32_0 : i32, i32
  }
  func.func @transform_16(%arg0: i32) -> (i32, i32) {
    %c0_i32 = arith.constant 0 : i32
    %c0_i32_0 = arith.constant 0 : i32
    %c0_i32_1 = arith.constant 0 : i32
    return %c0_i32, %c0_i32_0 : i32, i32
  }
  func.func @transform_17(%arg0: i32) -> (i32, i32) {
    %c0_i32 = arith.constant 0 : i32
    %c0_i32_0 = arith.constant 0 : i32
    %c0_i32_1 = arith.constant 0 : i32
    return %c0_i32, %c0_i32_0 : i32, i32
  }
  func.func @transform_18(%arg0: i32) -> (i32, i32) {
    %c0_i32 = arith.constant 0 : i32
    %c0_i32_0 = arith.constant 0 : i32
    %c0_i32_1 = arith.constant 0 : i32
    return %c0_i32, %c0_i32_0 : i32, i32
  }
  func.func @transform_19(%arg0: i32) -> (i32, i32) {
    %c0_i32 = arith.constant 0 : i32
    %c0_i32_0 = arith.constant 0 : i32
    %c0_i32_1 = arith.constant 0 : i32
    return %c0_i32, %c0_i32_0 : i32, i32
  }
  func.func @transform_20(%arg0: i32) -> (i32, i32) {
    %c0_i32 = arith.constant 0 : i32
    %c0_i32_0 = arith.constant 0 : i32
    %c0_i32_1 = arith.constant 0 : i32
    return %c0_i32, %c0_i32_0 : i32, i32
  }
  func.func @transform_21(%arg0: i32) -> (i32, i32) {
    %c0_i32 = arith.constant 0 : i32
    %c0_i32_0 = arith.constant 0 : i32
    %c0_i32_1 = arith.constant 0 : i32
    return %c0_i32, %c0_i32_0 : i32, i32
  }
  func.func @transform_22(%arg0: i32) -> (i32, i32) {
    %c0_i32 = arith.constant 0 : i32
    %c0_i32_0 = arith.constant 0 : i32
    %c0_i32_1 = arith.constant 0 : i32
    return %c0_i32, %c0_i32_0 : i32, i32
  }
  func.func @transform_23(%arg0: i32) -> (i32, i32) {
    %c0_i32 = arith.constant 0 : i32
    %c0_i32_0 = arith.constant 0 : i32
    %c0_i32_1 = arith.constant 0 : i32
    return %c0_i32, %c0_i32_0 : i32, i32
  }
  func.func @transform_24(%arg0: i32) -> (i32, i32) {
    %c0_i32 = arith.constant 0 : i32
    %c0_i32_0 = arith.constant 0 : i32
    %c0_i32_1 = arith.constant 0 : i32
    return %c0_i32, %c0_i32_0 : i32, i32
  }
  func.func @transform_25(%arg0: i32) -> (i32, i32) {
    %c0_i32 = arith.constant 0 : i32
    %c0_i32_0 = arith.constant 0 : i32
    %c0_i32_1 = arith.constant 0 : i32
    return %c0_i32, %c0_i32_0 : i32, i32
  }
  func.func @transform_26(%arg0: i32) -> (i32, i32) {
    %c0_i32 = arith.constant 0 : i32
    %c0_i32_0 = arith.constant 0 : i32
    %c0_i32_1 = arith.constant 0 : i32
    return %c0_i32, %c0_i32_0 : i32, i32
  }
  func.func @transform_27(%arg0: i32) -> (i32, i32) {
    %c0_i32 = arith.constant 0 : i32
    %c0_i32_0 = arith.constant 0 : i32
    %c0_i32_1 = arith.constant 0 : i32
    return %c0_i32, %c0_i32_0 : i32, i32
  }
  func.func @transform_28(%arg0: i32) -> (i32, i32) {
    %c0_i32 = arith.constant 0 : i32
    %c0_i32_0 = arith.constant 0 : i32
    %c0_i32_1 = arith.constant 0 : i32
    return %c0_i32, %c0_i32_0 : i32, i32
  }
  func.func @transform_29(%arg0: i32) -> (i32, i32, i32) {
    %c0_i32 = arith.constant 0 : i32
    %c0_i32_0 = arith.constant 0 : i32
    %c0_i32_1 = arith.constant 0 : i32
    return %arg0, %c0_i32, %c0_i32_0 : i32, i32, i32
  }
}

</mosaic_0001>

<bundles_post_ra>
// kernel: tpu_custom_call.1
= control target key start
LH: loop header
LB: loop body
LE: loop exit
PB: predicated region body
PF: predicated region fallthrough
CT: control target
= control target key end

     0   :  { %s4539_s6 = smov 1   ;;  %s4540_s10 = smov 2   ;;  %s5277_s0 = inlined_call_operand.smem [shape: u32[30], index: -1, kind: input, shape index: {}] }
   0x1   :  { %s4606_s5 = sld [smem:[%s5277_s0]]   ;;  %s4541_s14 = smov 3  }
   0x2   :  { %s4611_s9 = sld [smem:[%s5277_s0 + %s4539_s6]]   ;;  %s4542_s18 = smov 4  }
   0x3   :  { %s4616_s13 = sld [smem:[%s5277_s0 + %s4540_s10]]   ;;  %s4543_s22 = smov 5  }
   0x4   :  { %s4621_s17 = sld [smem:[%s5277_s0 + %s4541_s14]]   ;;  %s4544_s26 = smov 6  }
   0x5   :  { %s4626_s21 = sld [smem:[%s5277_s0 + %s4542_s18]]   ;;  %s4545_s30 = smov 7  }
   0x6   :  { %s4631_s25 = sld [smem:[%s5277_s0 + %s4543_s22]]   ;;  %s4546_s4 = smov 8  }
   0x7   :  { %5301 = sst [smem:[#allocation28_spill]] %s4606_s5  ;;  %s4547_s10 = smov 9  }
   0x8   :  { %5302 = sst [smem:[#allocation29_spill]] %s4611_s9  ;;  %s4548_s15 = smov 10  }
   0x9   :  { %5303 = sst [smem:[#allocation30_spill]] %s4616_s13  ;;  %s4549_s20 = smov 11  }
   0xa   :  { %5304 = sst [smem:[#allocation31_spill]] %s4621_s17  ;;  %s4551_s1 = smov 13  }
   0xb   :  { %5305 = sst [smem:[#allocation32_spill]] %s4626_s21  ;;  %s4552_s7 = smov 14  }
   0xc   :  { %s4636_s29 = sld [smem:[%s5277_s0 + %s4544_s26]]   ;;  %s4550_s26 = smov 12  }
   0xd   :  { %s4641_s3 = sld [smem:[%s5277_s0 + %s4545_s30]]   ;;  %s4554_s22 = smov 16  }
   0xe   :  { %s4646_s8 = sld [smem:[%s5277_s0 + %s4546_s4]]   ;;  %s4555_s28 = smov 17  }
   0xf   :  { %s4651_s14 = sld [smem:[%s5277_s0 + %s4547_s10]]  }
  0x10   :  { %s4656_s19 = sld [smem:[%s5277_s0 + %s4548_s15]]   ;;  %s4553_s15 = smov 15  }
  0x11   :  { %s4661_s24 = sld [smem:[%s5277_s0 + %s4549_s20]]  }
  0x12   :  { %s4666_s30 = sld [smem:[%s5277_s0 + %s4550_s26]]  }
  0x13   :  { %5306 = sst [smem:[#allocation33_spill]] %s4641_s3 }
  0x14   :  { %5307 = sst [smem:[#allocation34_spill]] %s4646_s8 }
  0x15   :  { %5308 = sst [smem:[#allocation35_spill]] %s4651_s14 }
  0x16   :  { %5309 = sst [smem:[#allocation36_spill]] %s4656_s19 }
  0x17   :  { %s4671_s6 = sld [smem:[%s5277_s0 + %s4551_s1]]  }
  0x18   :  { %s4676_s12 = sld [smem:[%s5277_s0 + %s4552_s7]]   ;;  %s4556_s7 = smov 18  }
  0x19   :  { %s4681_s20 = sld [smem:[%s5277_s0 + %s4553_s15]]   ;;  %s4557_s15 = smov 19  }
  0x1a   :  { %s4686_s27 = sld [smem:[%s5277_s0 + %s4554_s22]]   ;;  %s4558_s22 = smov 20  }
  0x1b   :  { %s4691_s4 = sld [smem:[%s5277_s0 + %s4555_s28]]   ;;  %s4559_s28 = smov 21  }
  0x1c   :  { %s4696_s21 = sld [smem:[%s5277_s0 + %s4556_s7]]   ;;  %s4560_s7 = smov 22  }
  0x1d   :  { %5310 = sst [smem:[#allocation37_spill]] %s4671_s6 }
  0x1e   :  { %5311 = sst [smem:[#allocation38_spill]] %s4676_s12 }
  0x1f   :  { %s4701_s17 = sld [smem:[%s5277_s0 + %s4557_s15]]   ;;  %s4561_s15 = smov 23  }
  0x20   :  { %s4706_s6 = sld [smem:[%s5277_s0 + %s4558_s22]]   ;;  %s4562_s22 = smov 24  }
  0x21   :  { %5312 = sst [smem:[#allocation39_spill]] %s4691_s4 }
  0x22   :  { %5313 = sst [smem:[#allocation40_spill]] %s4696_s21 }
  0x23   :  { %s4711_s4 = sld [smem:[%s5277_s0 + %s4559_s28]]   ;;  %s4563_s28 = smov 25  }
  0x24   :  { %s4716_s21 = sld [smem:[%s5277_s0 + %s4560_s7]]   ;;  %s4564_s7 = smov 26  }
  0x25   :  { %5314 = sst [smem:[#allocation41_spill]] %s4701_s17 }
  0x26   :  { %5315 = sst [smem:[#allocation42_spill]] %s4706_s6 }
  0x27   :  { %s4721_s17 = sld [smem:[%s5277_s0 + %s4561_s15]]   ;;  %s4565_s15 = smov 27  }
  0x28   :  { %s4726_s6 = sld [smem:[%s5277_s0 + %s4562_s22]]   ;;  %s4566_s22 = smov 28  }
  0x29   :  { %5316 = sst [smem:[#allocation43_spill]] %s4711_s4 }
  0x2a   :  { %5317 = sst [smem:[#allocation44_spill]] %s4716_s21 }
  0x2b   :  { %s4731_s4 = sld [smem:[%s5277_s0 + %s4563_s28]]   ;;  %s4567_s28 = smov 29  }
  0x2c   :  { %s4736_s21 = sld [smem:[%s5277_s0 + %s4564_s7]]  }
  0x2d   :  { %5318 = sst [smem:[#allocation45_spill]] %s4721_s17 }
  0x2e   :  { %5319 = sst [smem:[#allocation46_spill]] %s4726_s6 }
  0x2f   :  { %s4741_s17 = sld [smem:[%s5277_s0 + %s4565_s15]]  }
  0x30   :  { %s4746_s6 = sld [smem:[%s5277_s0 + %s4566_s22]]  }
  0x31   :  { %5320 = sst [smem:[#allocation47_spill]] %s4731_s4 }
  0x32   :  { %s4751_s4 = sld [smem:[%s5277_s0 + %s4567_s28]]  }
  0x36   :  { %5321 = sst [smem:[#allocation48_spill]] %s4746_s6 }
  0x38   :  { %5322 = sst [smem:[#allocation49_spill]] %s4751_s4 }
  0x39   :  { %64 = vsyncpa [#allocation3], 0 }
  0x3a   :  { %66 = vsyncpa [#allocation3 + $0x1], 0 }
  0x3b   :  { %67 = vsyncpa [#allocation6], 0 }
  0x3c   :  { %68 = vsyncpa [#allocation9], 0 }
  0x3d   :  { %69 = vsyncpa [#allocation12], 0 }
  0x3e   :  { %70 = vsyncpa [#allocation15], 0 }
  0x3f   :  { %71 = vsyncpa [#allocation18], 0 }
  0x40   :  { %72 = vsyncpa [#allocation4], 0 }
  0x41   :  { %74 = vsyncpa [#allocation4 + $0x1], 0  ;;  %s4753_s7 = smov 0   ;;  %s4755_s10 = smov 0  }
  0x42   :  { %s4757_s11 = smov 0   ;;  %s4759_s15 = smov 0  }
  0x43 LB: > { %s5323_s5 = sld [smem:[#allocation28_spill]]  ;;  %s4568_s0 = smov [#allocation5]   ;;  %s4529_s10 = sphi %s4755_s10, %s5377_s10   ;;  %s4525_s7 = sphi %s4753_s7, %s5376_s7   ;;  %s4537_s15 = sphi %s4759_s15, %s5379_s15   ;;  %s4533_s11 = sphi %s4757_s11, %s5378_s11  }
  0x44   : > { %s5324_s3 = sld [smem:[#allocation33_spill]]  ;;  %s738_s16 = sshll.u32 %s4568_s0, 4  ;;  %s739_s16 = int_to_ptr.vmem [resolvable:$true] %s738_s16 }
  0x45   : > { %s4774_s18 = sadd.s32 4294967295, %s4537_s15   ;;  %p3562_p0 = scmp.ge.s32.totalorder %s4537_s15, 1 }
  0x46   : > { %p5285_p1 = scmp.eq.s32.totalorder %s4774_s18, 0  ;;  %p725_p2 = scmp.lt.s32.totalorder %s4537_s15, 3 }
  0x47   : > { %s4569_s23 = smov [#allocation8]   ;;  %s4570_s28 = smov [#allocation11]  }
  0x48   : > { %p4779_p3 = pnand %p3562_p0, %p725_p2  ;;  %s771_s26 = sshll.u32 %s4569_s23, 4  ;;  %s772_s26 = int_to_ptr.vmem [resolvable:$true] %s771_s26 }
  0x49   : > { %s796_s1 = sshll.u32 %s4570_s28, 4  ;;  %s4571_s0 = smov [#allocation14]   ;;  %s4792_s1 = int_to_ptr.vmem [resolvable:$true] %s796_s1 }
  0x4a   : > { %s5325_s22 = scalar_select %p4779_p3, 1, 0 }
  0x4b   : > { %p3975_p5 = pneg %p4779_p3  ;;  %s4794_s4 = sshll.u32 %s4571_s0, 4  ;;  %s822_s4 = int_to_ptr.vmem [resolvable:$true] %s4794_s4 }
  0x4c   : > { %s4176_s23 = scalar_lea.vmem %s739_s16, 128  ;;  %p4184_p11 = scmp.lt.s32.totalorder %s739_s16, %s739_s16 }
  0x4d   : > { %p4788_p6 = pnand %p3975_p5, %p5285_p1  ;;  %p4177_p8 = scmp.ne.s32.totalorder %s739_s16, %s4176_s23 }
  0x4e   : > { %p4185_p12 = scmp.lt.s32.totalorder %s4176_s23, %s4176_s23 }
  0x4f   : > { %p4798_p7 = pneg %p4788_p6 }
  0x50   : > { %p4186_p13 = por %p4185_p12, %p4184_p11 }
  0x51   : > { %p4179_p9 = pnand %p4177_p8, %p4798_p7 }
  0x53   : > { %p4180_p10 = pneg %p4179_p9 }
  0x55   : > { %p4187_p0 = pnand %p4186_p13, %p4180_p10 }
  0x57   : > { %4190 = shalt.err (!%p4187_p0)
}
  0x58   : > { %s5328_s9 = sld [smem:[#allocation29_spill]]  ;;  %s4202_s28 = scalar_lea.vmem %s772_s26, 16 }
  0x59   : > { %p4203_p2 = scmp.ne.s32.totalorder %s772_s26, %s4202_s28  ;;  %s4209_s0 = scalar_lea.vmem %s772_s26, 32 }
  0x5a   : > { %p4210_p1 = scmp.lt.s32.totalorder %s772_s26, %s772_s26  ;;  %p4211_p3 = scmp.lt.s32.totalorder %s4209_s0, %s4202_s28 }
  0x5b   : > { %p4205_p5 = pnand %p4203_p2, %p4798_p7 }
  0x5c   : > { %p4212_p8 = por %p4211_p3, %p4210_p1 }
  0x5d   : > { %p4206_p4 = pneg %p4205_p5 }
  0x5e   : > { %3978 = dma.hbm_to_vmem [thread:$0]  (!%p4788_p6), %s5328_s9, 128, %s739_s16, [#allocation6]  }
  0x5f   : > { %p4213_p9 = pnand %p4212_p8, %p4206_p4 }
  0x61   : > { %4216 = shalt.err (!%p4213_p9)
}
  0x62   : > { %3984 = dma.hbm_to_vmem [thread:$0]  (!%p4788_p6), %s4636_s29, 16, %s772_s26, [#allocation9]  }
  0x63   : > { %s4228_s16 = scalar_lea.vmem %s4792_s1, 16  ;;  %s4235_s23 = scalar_lea.vmem %s4792_s1, 32 }
  0x64   : > { %p4229_p10 = scmp.ne.s32.totalorder %s4792_s1, %s4228_s16  ;;  %p4236_p13 = scmp.lt.s32.totalorder %s4792_s1, %s4792_s1 }
  0x65   : > { %p4237_p1 = scmp.lt.s32.totalorder %s4235_s23, %s4228_s16 }
  0x66   : > { %p4231_p11 = pnand %p4229_p10, %p4798_p7 }
  0x67   : > { %p4238_p3 = por %p4237_p1, %p4236_p13 }
  0x68   : > { %p4232_p12 = pneg %p4231_p11 }
  0x6a   : > { %p4239_p4 = pnand %p4238_p3, %p4232_p12 }
  0x6c   : > { %4242 = shalt.err (!%p4239_p4)
}
  0x6d   : > { %s5329_s14 = sld [smem:[#allocation35_spill]]  ;;  %s4572_s26 = smov [#allocation17]  }
  0x6e   : > { %s846_s28 = sshll.u32 %s4572_s26, 4  ;;  %s4254_s0 = scalar_lea.vmem %s822_s4, 16  ;;  %s847_s28 = int_to_ptr.vmem [resolvable:$true] %s846_s28 }
  0x6f   : > { %p4255_p0 = scmp.ne.s32.totalorder %s822_s4, %s4254_s0  ;;  %s4261_s9 = scalar_lea.vmem %s822_s4, 32 }
  0x70   : > { %p4262_p8 = scmp.lt.s32.totalorder %s822_s4, %s822_s4  ;;  %p4263_p9 = scmp.lt.s32.totalorder %s4261_s9, %s4254_s0 }
  0x71   : > { %p4257_p2 = pnand %p4255_p0, %p4798_p7 }
  0x72   : > { %p4264_p10 = por %p4263_p9, %p4262_p8 }
  0x73   : > { %3990 = dma.hbm_to_vmem [thread:$0]  (!%p4788_p6), %s5329_s14, 16, %s4792_s1, [#allocation12]  }
  0x74   : > { %p4258_p5 = pneg %p4257_p2 }
  0x76   : > { %p4265_p11 = pnand %p4264_p10, %p4258_p5 }
  0x78   : > { %4268 = shalt.err (!%p4265_p11)
}
  0x79   : > { %3996 = dma.hbm_to_vmem [thread:$0]  (!%p4788_p6), %s4666_s30, 16, %s822_s4, [#allocation15]  }
  0x7a   : > { %s4280_s1 = scalar_lea.vmem %s847_s28, 16  ;;  %s4287_s16 = scalar_lea.vmem %s847_s28, 32 }
  0x7b   : > { %p4281_p12 = scmp.ne.s32.totalorder %s847_s28, %s4280_s1  ;;  %p4288_p3 = scmp.lt.s32.totalorder %s847_s28, %s847_s28 }
  0x7c   : > { %p4289_p4 = scmp.lt.s32.totalorder %s4287_s16, %s4280_s1 }
  0x7d   : > { %p4283_p13 = pnand %p4281_p12, %p4798_p7 }
  0x7e   : > { %p4290_p0 = por %p4289_p4, %p4288_p3 }
  0x7f   : > { %p4284_p1 = pneg %p4283_p13 }
  0x81   : > { %p4291_p2 = pnand %p4290_p0, %p4284_p1 }
  0x83   : > { %4294 = shalt.err (!%p4291_p2)
}
  0x84   : > { %4002 = dma.hbm_to_vmem [thread:$0]  (!%p4788_p6), %s4681_s20, 16, %s847_s28, [#allocation18]  }
  0x85   : > { %s4573_s9 = smov [#allocation7]  }
  0x86   : > { %s748_s23 = sshll.u32 %s4573_s9, 4  ;;  %s749_s23 = int_to_ptr.vmem [resolvable:$true] %s748_s23 }
  0x87   : > { %s4306_s4 = scalar_lea.vmem %s749_s23, 256  ;;  %p4314_p10 = scmp.lt.s32.totalorder %s749_s23, %s749_s23 }
  0x88   : > { %p4307_p5 = scmp.ne.s32.totalorder %s749_s23, %s4306_s4  ;;  %p4315_p11 = scmp.lt.s32.totalorder %s4306_s4, %s4306_s4 }
  0x8a   : > { %p4309_p8 = pnand %p4307_p5, %p4798_p7  ;;  %p4316_p12 = por %p4315_p11, %p4314_p10 }
  0x8c   : > { %p4310_p9 = pneg %p4309_p8 }
  0x8e   : > { %p4317_p13 = pnand %p4316_p12, %p4310_p9 }
  0x90   : > { %4320 = shalt.err (!%p4317_p13)
}
  0x91   : > { %s4574_s26 = smov 128   ;;  %s5330_s13 = sld [smem:[#allocation30_spill]] }
  0x92   : > { %s4575_s0 = smov 8   ;;  %s4576_s28 = smov [#allocation10]  }
  0x93   : > { %s785_s1 = sshll.u32 %s4576_s28, 4  ;;  %s4577_s16 = smov [#allocation13]   ;;  %s786_s1 = int_to_ptr.vmem [resolvable:$true] %s785_s1 }
  0x94   : > { %s807_s9 = sshll.u32 %s4577_s16, 4  ;;  %s4332_s14 = scalar_lea.vmem %s786_s1, 16  ;;  %s808_s9 = int_to_ptr.vmem [resolvable:$true] %s807_s9 }
  0x95   : > { %p4333_p1 = scmp.ne.s32.totalorder %s786_s1, %s4332_s14  ;;  %s4339_s4 = scalar_lea.vmem %s786_s1, 32 }
  0x96   : > { %p4340_p0 = scmp.lt.s32.totalorder %s786_s1, %s786_s1  ;;  %p4341_p2 = scmp.lt.s32.totalorder %s4339_s4, %s4332_s14 }
  0x97   : > { %3981 = dma.hbm_to_vmem [thread:$0]  (!%p4788_p6), %s5330_s13, 256, %s749_s23, [#allocation6], %s4574_s26, %s4574_s26, %s4575_s0  }
  0x98   : > { %p4335_p3 = pnand %p4333_p1, %p4798_p7  ;;  %p4342_p5 = por %p4341_p2, %p4340_p0 }
  0x9a   : > { %p4336_p4 = pneg %p4335_p3 }
  0x9c   : > { %p4343_p8 = pnand %p4342_p5, %p4336_p4 }
  0x9e   : > { %4346 = shalt.err (!%p4343_p8)
}
  0x9f   : > { %s5331_s8 = sld [smem:[#allocation34_spill]]  ;;  %s4358_s23 = scalar_lea.vmem %s808_s9, 16 }
  0xa0   : > { %p4359_p9 = scmp.ne.s32.totalorder %s808_s9, %s4358_s23  ;;  %s4365_s26 = scalar_lea.vmem %s808_s9, 32 }
  0xa1   : > { %p4366_p12 = scmp.lt.s32.totalorder %s808_s9, %s808_s9  ;;  %p4367_p13 = scmp.lt.s32.totalorder %s4365_s26, %s4358_s23 }
  0xa2   : > { %p4361_p10 = pnand %p4359_p9, %p4798_p7 }
  0xa3   : > { %p4368_p1 = por %p4367_p13, %p4366_p12 }
  0xa4   : > { %p4362_p11 = pneg %p4361_p10 }
  0xa5   : > { %3987 = dma.hbm_to_vmem [thread:$0]  (!%p4788_p6), %s5331_s8, 16, %s786_s1, [#allocation9]  }
  0xa6   : > { %p4369_p3 = pnand %p4368_p1, %p4362_p11 }
  0xa8   : > { %4372 = shalt.err (!%p4369_p3)
}
  0xa9   : > { %s5332_s19 = sld [smem:[#allocation36_spill]]  ;;  %s4578_s14 = smov [#allocation16]  }
  0xaa   : > { %s835_s0 = sshll.u32 %s4578_s14, 4  ;;  %s4579_s28 = smov [#allocation19]   ;;  %s836_s0 = int_to_ptr.vmem [resolvable:$true] %s835_s0 }
  0xab   : > { %s857_s1 = sshll.u32 %s4579_s28, 4  ;;  %s4384_s16 = scalar_lea.vmem %s836_s0, 16  ;;  %s858_s1 = int_to_ptr.vmem [resolvable:$true] %s857_s1 }
  0xac   : > { %p4385_p4 = scmp.ne.s32.totalorder %s836_s0, %s4384_s16  ;;  %s4391_s4 = scalar_lea.vmem %s836_s0, 32 }
  0xad   : > { %p4392_p5 = scmp.lt.s32.totalorder %s836_s0, %s836_s0  ;;  %p4393_p8 = scmp.lt.s32.totalorder %s4391_s4, %s4384_s16 }
  0xae   : > { %p4387_p0 = pnand %p4385_p4, %p4798_p7 }
  0xaf   : > { %3993 = dma.hbm_to_vmem [thread:$0]  (!%p4788_p6), %s5332_s19, 16, %s808_s9, [#allocation12]  }
  0xb0   : > { %p4388_p2 = pneg %p4387_p0  ;;  %p4394_p9 = por %p4393_p8, %p4392_p5 }
  0xb2   : > { %p4395_p10 = pnand %p4394_p9, %p4388_p2 }
  0xb4   : > { %4398 = shalt.err (!%p4395_p10)
}
  0xb5   : > { %s5333_s12 = sld [smem:[#allocation38_spill]]  ;;  %s4410_s9 = scalar_lea.vmem %s858_s1, 16 }
  0xb6   : > { %p4411_p11 = scmp.ne.s32.totalorder %s858_s1, %s4410_s9  ;;  %s4417_s23 = scalar_lea.vmem %s858_s1, 32 }
  0xb7   : > { %p4418_p1 = scmp.lt.s32.totalorder %s858_s1, %s858_s1  ;;  %p4419_p3 = scmp.lt.s32.totalorder %s4417_s23, %s4410_s9 }
  0xb8   : > { %p4413_p12 = pnand %p4411_p11, %p4798_p7 }
  0xb9   : > { %p4420_p4 = por %p4419_p3, %p4418_p1 }
  0xba   : > { %p4414_p13 = pneg %p4413_p12 }
  0xbb   : > { %3999 = dma.hbm_to_vmem [thread:$0]  (!%p4788_p6), %s5333_s12, 16, %s836_s0, [#allocation15]  }
  0xbc   : > { %p4421_p0 = pnand %p4420_p4, %p4414_p13 }
  0xbe   : > { %4424 = shalt.err (!%p4421_p0)
}
  0xbf   : > { %4005 = dma.hbm_to_vmem [thread:$0]  (!%p4788_p6), %s4686_s27, 16, %s858_s1, [#allocation18]  }
  0xc0   : > { %s3561_s6 = sadd.s32 4294967294, %s4537_s15   ;;  %s4861_s26 = sadd.s32 1, %s4537_s15  }
  0xc1   : > { %s84_s2 = ssub.s32 %s4537_s15, %s4861_s26  ;;  %s87_s14 = sadd.s32 1, %s4533_s11 }
  0xc2   : > { %p85_p7 = scmp.eq.s32.totalorder %s84_s2, 0  ;;  %p94_p2 = scmp.ne.s32.totalorder %s4533_s11, %s4529_s10 }
  0xc3   : > { %p95_p5 = scmp.eq.s32.totalorder %s4537_s15, 0  ;;  %p100_p8 = scmp.ne.s32.totalorder %s4529_s10, %s4525_s7 }
  0xc4   : > { %s4872_s0 = scalar_select %p85_p7, %s4533_s11, %s87_s14  }
  0xc5   : > { %p4874_p9 = por %p95_p5, %p94_p2  ;;  %p5335_p10 = scmp.eq.s32.totalorder %s4774_s18, 0 }
  0xc6   : > { %p712_p11 = scmp.eq.s32.totalorder %s4774_s18, 1  ;;  %p718_p12 = scmp.eq.s32.totalorder %s3561_s6, 1 }
  0xc7   : > { %p4880_p6 = por %p5335_p10, %p100_p8  ;;  %p4024_p13 = scmp.lt.s32.totalorder %s4537_s15, 2 }
  0xc8   : > { %s904_s16 = sand.u32 1, %s4533_s11   ;;  %p4887_p1 = por %p712_p11, %p94_p2 }
  0xc9   : > { %s5336_s1 = scalar_select %p4880_p6, 1, 0 }
  0xca   : > { %s5337_s4 = scalar_select %p4887_p1, 1, 0 }
  0xcb   : > { %p4891_p3 = por %p718_p12, %p100_p8  ;;  %s3574_s23 = sshll.u32 %s904_s16, 3 }
  0xcc   : > { %s3575_s2 = sshll.u32 %s4537_s15, 7  ;;  %s908_s6 = scalar_lea.vmem [#allocation2], %s3574_s23 }
  0xcd   : > { %s5338_s9 = scalar_select %p4891_p3, 1, 0 }
  0xce   : > { %s4897_s14 = scalar_lea.hbm %s5323_s5, %s3575_s2  ;;  %s915_s8 = sshll.u32 %s908_s6, 4  ;;  %s916_s8 = int_to_ptr.vmem [resolvable:$true] %s915_s8 }
  0xcf   : > { %p4901_p4 = pnand %p4024_p13, %p4874_p9  ;;  %s905_s13 = scalar_lea.sflag [#allocation3], %s904_s16 }
  0xd0   : > { %s4425_s19 = scalar_lea.hbm %s4897_s14, 128  ;;  %s4430_s2 = scalar_lea.hbm %s5323_s5, 256 }
  0xd1   : > { %s5339_s12 = scalar_select %p4901_p4, 1, 0 }
  0xd2   : > { %p4426_p0 = scmp.ne.s32.totalorder %s4897_s14, %s4425_s19  ;;  %p4427_p7 = pneg %p4901_p4 }
  0xd3   : > { %p4431_p8 = scmp.lt.s32.totalorder %s4897_s14, %s5323_s5  ;;  %p4432_p10 = scmp.lt.s32.totalorder %s4430_s2, %s4425_s19 }
  0xd4   : > { %p4428_p2 = pnand %p4427_p7, %p4426_p0 }
  0xd5   : > { %p4433_p11 = por %p4432_p10, %p4431_p8 }
  0xd6   : > { %p4429_p5 = pneg %p4428_p2 }
  0xd8   : > { %p4434_p12 = pnand %p4433_p11, %p4429_p5 }
  0xda   : > { %4437 = shalt.err (!%p4434_p12)
}
  0xdb   : > { %s4438_s23 = scalar_lea.vmem %s916_s8, 128  ;;  %s4580_s28 = smov [#allocation2]  }
  0xdc   : > { %p4439_p3 = scmp.ne.s32.totalorder %s916_s8, %s4438_s23  ;;  %s4443_s6 = sshll.u32 %s4580_s28, 4  ;;  %s4444_s6 = int_to_ptr.vmem [resolvable:$false] %s4443_s6 }
  0xdd   : > { %s4445_s16 = scalar_lea.vmem %s4444_s6, 256  ;;  %p4446_p1 = scmp.lt.s32.totalorder %s916_s8, %s4444_s6 }
  0xde   : > { %p4441_p9 = pnand %p4439_p3, %p4427_p7  ;;  %p4447_p6 = scmp.lt.s32.totalorder %s4445_s16, %s4438_s23 }
  0xe0   : > { %p4442_p13 = pneg %p4441_p9  ;;  %p4448_p4 = por %p4447_p6, %p4446_p1 }
  0xe2   : > { %p4449_p0 = pnand %p4448_p4, %p4442_p13 }
  0xe4   : > { %4452 = shalt.err (!%p4449_p0)
}
  0xe5   : > { %p5340_p2 = scmp.ne.s32.totalorder %s5339_s12, 0  ;;  %p5341_p5 = scmp.ne.s32.totalorder %s5325_s22, 0 }
  0xe6   : > { %s4918_s19 = sand.u32 (!%p5341_p5), 1, %s4529_s10   ;;  %p5342_p3 = scmp.ne.s32.totalorder (!%p5341_p5), %s5336_s1, 0 }
  0xe7   : > { %4009 = dma.hbm_to_vmem [thread:$0]  (!%p5340_p2), %s4897_s14, 128, %s916_s8, %s905_s13  }
  0xe8   : > { %924 = sbr.rel (%p5341_p5) target bundleno = 5447 (0x1547), region = 136  ;;  %s3577_s2 = sshll.u32 (!%p5341_p5), %s4918_s19, 3 }
  0xe9   : > { %s927_s28 = scalar_lea.sflag (!%p5341_p5), [#allocation3], %s4918_s19  ;;  %s930_s6 = scalar_lea.vmem (!%p5341_p5), [#allocation2], %s3577_s2 }
  0xed   : > { %4496 = dma.done.wait (%p5342_p3), %s927_s28, 128  }
  0xee   : > { %4498 = vsyncadd (%p5342_p3), %s927_s28, 4294967168  ;;  %p5343_p6 = scmp.eq.s32.totalorder %s4774_s18, 0 }
  0xf0   : > { %4500 = dma.done.wait (%p5343_p6), [#allocation6], 384   ;;  %p5344_p1 = pmov %p5343_p6 }
  0xf2   : > { %4502 = vsyncadd (%p5344_p1), [#allocation6], 4294966912  ;;  %p5345_p4 = pmov %p5344_p1 }
  0xf3   : > { %p5346_p7 = pmov %p5344_p1 }
  0xf4   : > { %4504 = dma.done.wait (%p5345_p4), [#allocation9], 32  }
  0xf5   : > { %4506 = vsyncadd (%p5346_p7), [#allocation9], 4294967264  ;;  %p5347_p8 = pmov %p5344_p1 }
  0xf6   : > { %p5348_p10 = pmov %p5344_p1 }
  0xf7   : > { %4508 = dma.done.wait (%p5347_p8), [#allocation12], 32  }
  0xf8   : > { %4510 = vsyncadd (%p5348_p10), [#allocation12], 4294967264  ;;  %p5349_p11 = pmov %p5344_p1 }
  0xf9   : > { %p5350_p12 = pmov %p5344_p1 }
  0xfa   : > { %4512 = dma.done.wait (%p5349_p11), [#allocation15], 32  }
  0xfb   : > { %4514 = vsyncadd (%p5350_p12), [#allocation15], 4294967264  ;;  %p5351_p9 = pmov %p5344_p1 }
  0xfc   : > { %p5352_p13 = pmov %p5344_p1 }
  0xfd   : > { %4516 = dma.done.wait (%p5351_p9), [#allocation18], 32  }
  0xfe   : > { %4518 = vsyncadd (%p5352_p13), [#allocation18], 4294967264  ;;  %v4581_v0 = vmov 0.0   ;;  %vm4582_vm0 = vmmov 0   ;;  %v1046_v1 = vld [vmem:[#allocation7 + $0x8] sm:$0xff]  ;;  %v1045_v2 = vld [vmem:[#allocation7] sm:$0xff] }
  0xff   : > { %3729 = vmatprep.subr.mxu0 %v4581_v0  ;;  %3733 = vmatprep.mubr.msk.f32.mxu0 %vm4582_vm0, %v4581_v0  ;;  %v1044_v3 = vld [vmem:[%s930_s6] sm:$0xff]  ;;  %vm1048_vm1 = vcmask 130048   ;;  %v1125_v4 = vld [vmem:[%s4631_s25 + $0x18] sm:$0xff]  ;;  %v1124_v5 = vld [vmem:[%s4631_s25 + $0x10] sm:$0xff]  ;;  %vm1133_vm2 = vcmask 261120   ;;  %s4583_s13 = smov 120  }
 0x100   : > { %3736 = vmatprep.subr.mxu1 %v4581_v0  ;;  %3744 = vmatprep.mubr.msk.f32.mxu1 %vm4582_vm0, %v4581_v0  ;;  %v1123_v6 = vld [vmem:[%s4631_s25 + $0x8] sm:$0xff]  ;;  %v1122_v7 = vld [vmem:[%s4631_s25] sm:$0xff]  ;;  %v1047_v8 = vld [vmem:[#allocation5] sm:$0xff]  ;;  %s4584_s8 = smov 96   ;;  %s4585_s12 = smov 80   ;;  %vm1210_vm3 = vcmask 64512  }
 0x101   : > { %3730 = vmatpush3.msra.mxu0 %v1046_v1  ;;  %3737 = vmatpush3.msra.mxu1 %v1125_v4  ;;  %v3589_v12 = vld [vmem:[#allocation8] ss:$0 sm:$0xff]  ;;  %s4586_s22 = smov 88   ;;  %s4587_s1 = smov 72   ;;  %vm1881_vm4 = vcmask 195584   ;;  %vm2098_vm5 = vcmask 523264  }
 0x102   : > { %3731 = vmatprep.subr.mxu0 %v4581_v0  ;;  %3738 = vmatprep.subr.mxu1 %v4581_v0  ;;  %s4588_s14 = smov 112   ;;  %s4589_s23 = smov 104   ;;  %vm3356_vm6 = vcmask 16384  }
 0x103   : > { %3732 = vmatpush3.msra.mxu0 %v1045_v2  ;;  %3739 = vmatpush3.msra.mxu1 %v1124_v5  ;;  %s4590_s16 = smov 56   ;;  %s5295_s2 = smov 64  }
 0x104   : > { %3734 = vmatmul.mubr.msk.f32.vlgmr.msra.gmra.mxu0 %vm1048_vm1, %v1044_v3  ;;  %3740 = vmatprep.subr.mxu1 %v4581_v0  ;;  %s5291_s28 = smov 48   ;;  %s5290_s6 = smov 40  }
 0x105   : > { %3747 = vmatprep.subr.mxu0 %v4581_v0  ;;  %3749 = vmatprep.mubr.msk.f32.mxu0 %vm4582_vm0, %v4581_v0  ;;  %p5373_p2 = scmp.ne.s32.totalorder %s5337_s4, 0 }
 0x106   : > { %3741 = vmatpush3.msra.mxu1 %v1123_v6 }
 0x107   : > { %3742 = vmatprep.subr.mxu1 %v4581_v0 }
 0x108   : > { %3743 = vmatpush3.msra.mxu1 %v1122_v7 }
 0x109   : > { %3757 = vmatprep.subr.mxu1 %v4581_v0 }
 0x1c4   : > { %v1118_v9 = vpop.f32.mrf.mxu0 }
 0x1c5   : > { %v4965_v10 = vadd.f32 %v1118_v9, %v1047_v8  ;;  %v1886_v8 = vld [vmem:[%s5324_s3 + $0x18] sm:$0xff] }
 0x1c6   : > { %v3735_v11 = vpop.f32.mrf.mxu0 }
 0x1c7   : > { %3745 = vmatmul.mubr.msk.f32.vlgmr.msra.gmra.mxu1 %vm1133_vm2, %v4965_v10 }
 0x1c8   : > { %3759 = vmatprep.mubr.msk.f32.mxu1 %vm4582_vm0, %v4581_v0 }
 0x287   : > { %v1203_v13 = vpop.f32.mrf.mxu1 }
 0x288   : > { %v4971_v14 = vadd.f32 %v3589_v12, %v1203_v13 }
 0x289   : > { %v3746_v15 = vpop.f32.mrf.mxu1 }
 0x28a   : > { %1372 = vrot.lane.b32.xlu1 %v4971_v14, %s4583_s13  ;;  %1208 = vrot.lane.b32.xlu0 %v4971_v14, %s4584_s8  ;;  %v1884_v15 = vld [vmem:[%s5324_s3 + $0x8] sm:$0xff] }
 0x28e   : > { %1539 = vrot.lane.b32.xlu1 %v4971_v14, %s4585_s12  ;;  %1374 = vrot.lane.b32.xlu0 %v4971_v14, %s4586_s22 }
 0x292   : > { %1704 = vrot.lane.b32.xlu1 %v4971_v14, %s4587_s1  ;;  %1537 = vrot.lane.b32.xlu0 %v4971_v14, %s4588_s14 }
 0x296   : > { %1702 = vrot.lane.b32.xlu0 %v4971_v14, %s4589_s23 }
 0x2fc   : > { %v1373_v16 = vpop.permute.xlu1 %1372  ;;  %v1209_v17 = vpop.permute.xlu0 %1208 }
 0x2fd   : > { %3748 = vmatpush3.xpose.msk.msra.mxu0 %vm1210_vm3, %v1209_v17 }
 0x2fe   : > { %3752 = vmatprep.subr.mxu0 %v4581_v0 }
 0x300   : > { %3750 = vmatmul.mubr.msk.f32.vlgmr.msra.gmra.mxu0 %vm1210_vm3, %v4971_v14  ;;  %v1375_v18 = vpop.permute.xlu0 %1374  ;;  %v1540_v19 = vpop.permute.xlu1 %1539 }
 0x301   : > { %3758 = vmatpush3.xpose.msk.msra.mxu1 %vm1210_vm3, %v1375_v18  ;;  %3754 = vmatprep.mubr.msk.f32.mxu0 %vm4582_vm0, %v4581_v0 }
 0x302   : > { %3767 = vmatprep.subr.mxu1 %v4581_v0 }
 0x304   : > { %3760 = vmatmul.mubr.msk.f32.vlgmr.msra.gmra.mxu1 %vm1210_vm3, %v1373_v16  ;;  %v1538_v20 = vpop.permute.xlu0 %1537  ;;  %v1705_v21 = vpop.permute.xlu1 %1704  ;;  %v1883_v16 = vld [vmem:[%s5324_s3] sm:$0xff] }
 0x305   : > { %3768 = vmatpush3.xpose.msk.msra.mxu1 %vm1210_vm3, %v1540_v19  ;;  %3769 = vmatprep.mubr.msk.f32.mxu1 %vm4582_vm0, %v4581_v0 }
 0x306   : > { %3777 = vmatprep.subr.mxu1 %v4581_v0 }
 0x308   : > { %3770 = vmatmul.mubr.msk.f32.vlgmr.msra.gmra.mxu1 %vm1210_vm3, %v1538_v20  ;;  %v1703_v22 = vpop.permute.xlu0 %1702 }
 0x309   : > { %3778 = vmatpush3.xpose.msk.msra.mxu1 %vm1210_vm3, %v1705_v21  ;;  %3779 = vmatprep.mubr.msk.f32.mxu1 %vm4582_vm0, %v4581_v0 }
 0x30a   : > { %3787 = vmatprep.subr.mxu1 %v4581_v0 }
 0x30c   : > { %3780 = vmatmul.mubr.msk.f32.vlgmr.msra.gmra.mxu1 %vm1210_vm3, %v1703_v22 }
 0x30d   : > { %3795 = vmatprep.mubr.msk.f32.mxu1 %vm4582_vm0, %v4581_v0  ;;  %3788 = vmatpush3.msra.mxu1 %v1886_v8 }
 0x30e   : > { %3789 = vmatprep.subr.mxu1 %v4581_v0 }
 0x3c0   : > { %v1281_v23 = vpop.f32.mrf.mxu0 }
 0x3c1   : > { %v1285_v24 = vsel %vm1210_vm3, %v1281_v23, -inf }
 0x3c2   : > { %1286 = vmax.xlane.f32.xlu1 %v1285_v24  ;;  %v3751_v25 = vpop.f32.mrf.mxu0 }
 0x3c4   : > { %v1446_v26 = vpop.f32.mrf.mxu1 }
 0x3c5   : > { %v1450_v27 = vsel %vm1210_vm3, %v1446_v26, -inf }
 0x3c6   : > { %1451 = vmax.xlane.f32.xlu0 %v1450_v27  ;;  %v3761_v28 = vpop.f32.mrf.mxu1  ;;  %v3603_v27 = vld [vmem:[#allocation10] ss:$0 sm:$0xff] }
 0x3c8   : > { %v1611_v29 = vpop.f32.mrf.mxu1 }
 0x3c9   : > { %v1615_v30 = vsel %vm1210_vm3, %v1611_v29, -inf }
 0x3ca   : > { %1616 = vmax.xlane.f32.xlu0 %v1615_v30  ;;  %v3771_v31 = vpop.f32.mrf.mxu1 }
 0x3cc   : > { %v1776_v32 = vpop.f32.mrf.mxu1 }
 0x3cd   : > { %v1780_v33 = vsel %vm1210_vm3, %v1776_v32, -inf }
 0x3ce   : > { %v3781_v34 = vpop.f32.mrf.mxu1  ;;  %1781 = vmax.xlane.f32.xlu1 %v1780_v33 }
 0x3df   : > { %1461 = vrot.lane.b32.xlu1 %v4971_v14, %s4590_s16 }
 0x44b   : > { %v1287_v35 = vpop.xlane.xlu1 %1286 }
 0x44c   : > { %v1288_v36 = vsub.f32 %v1281_v23, %v1287_v35 }
 0x44e   : > { %v1289_v37 = vmul.f32 1.442695, %v1288_v36 }
 0x44f   : > { %v1452_v38 = vpop.xlane.xlu0 %1451 }
 0x450   : > { %4125 = vpow2.f32 %v1289_v37  ;;  %v1453_v39 = vsub.f32 %v1446_v26, %v1452_v38  ;;  %v2001_v38 = vld [vmem:[%s4661_s24 + $0x18] sm:$0xff] }
 0x452   : > { %v1454_v40 = vmul.f32 1.442695, %v1453_v39  ;;  %v2000_v39 = vld [vmem:[%s4661_s24 + $0x10] sm:$0xff] }
 0x453   : > { %v1617_v50 = vpop.xlane.xlu0 %1616 }
 0x454   : > { %4127 = vpow2.f32 %v1454_v40  ;;  %v1618_v51 = vsub.f32 %v1611_v29, %v1617_v50  ;;  %v1998_v40 = vld [vmem:[%s4661_s24] sm:$0xff]  ;;  %v3605_v50 = vld [vmem:[#allocation11] ss:$0 sm:$0xff] }
 0x456   : > { %v1619_v52 = vmul.f32 1.442695, %v1618_v51 }
 0x457   : > { %v1782_v41 = vpop.xlane.xlu1 %1781 }
 0x458   : > { %v1783_v42 = vsub.f32 %v1776_v32, %v1782_v41 }
 0x45a   : > { %v1784_v43 = vmul.f32 1.442695, %v1783_v42 }
 0x45b   : > { %v1462_v55 = vpop.permute.xlu1 %1461 }
 0x45c   : > { %4129 = vpow2.f32 %v1784_v43 }
 0x45d   : > { %v4126_v44 = vpop.eup %4125  ;;  %4131 = vpow2.f32 %v1619_v52  ;;  %v3606_v52 = vld [vmem:[#allocation13] ss:$0 sm:$0xff] }
 0x45e   : > { %v1291_v45 = vsel %vm1210_vm3, %v4126_v44, 0.0 }
 0x45f   : > { %1292 = vadd.xlane.f32.xlu0 %v1291_v45 }
 0x461   : > { %v4128_v46 = vpop.eup %4127 }
 0x462   : > { %v1456_v47 = vsel %vm1210_vm3, %v4128_v46, 0.0 }
 0x463   : > { %1457 = vadd.xlane.f32.xlu1 %v1456_v47 }
 0x469   : > { %v4130_v48 = vpop.eup %4129 }
 0x46a   : > { %v1786_v49 = vsel %vm1210_vm3, %v4130_v48, 0.0  ;;  %v4132_v53 = vpop.eup %4131 }
 0x46b   : > { %1787 = vadd.xlane.f32.xlu1 %v1786_v49  ;;  %v1621_v54 = vsel %vm1210_vm3, %v4132_v53, 0.0 }
 0x475   : > { %1296 = vrot.lane.b32.xlu0 %v4971_v14, %s5295_s2  ;;  %s5355_s2 = sld [smem:[#allocation40_spill]] }
 0x47c   : > { %1626 = vrot.lane.b32.xlu1 %v4971_v14, %s5291_s28  ;;  %s5294_s28 = smov 16  }
 0x494   : > { %1622 = vadd.xlane.f32.xlu0 %v1621_v54 }
 0x4aa   : > { %1791 = vrot.lane.b32.xlu0 %v4971_v14, %s5290_s6  ;;  %s5292_s6 = smov 8   ;;  %v1885_v14 = vld [vmem:[%s5324_s3 + $0x10] sm:$0xff] }
 0x4ab   : > { %3790 = vmatpush3.msra.mxu1 %v1885_v14 }
 0x4ac   : > { %3791 = vmatprep.subr.mxu1 %v4581_v0 }
 0x4ad   : > { %3792 = vmatpush3.msra.mxu1 %v1884_v15 }
 0x4ae   : > { %3793 = vmatprep.subr.mxu1 %v4581_v0 }
 0x4af   : > { %3794 = vmatpush3.msra.mxu1 %v1883_v16 }
 0x4b0   : > { %3809 = vmatprep.subr.mxu1 %v4581_v0 }
 0x4e8   : > { %v1293_v56 = vpop.xlane.xlu0 %1292 }
 0x4e9   : > { %4133 = vrcp.f32 %v1293_v56 }
 0x4ec   : > { %v1297_v57 = vpop.permute.xlu0 %1296  ;;  %v1458_v58 = vpop.xlane.xlu1 %1457 }
 0x4ed   : > { %4135 = vrcp.f32 %v1458_v58  ;;  %3753 = vmatpush3.msra.mxu0 %v1297_v57  ;;  %v3607_v58 = vld [vmem:[#allocation14] ss:$0 sm:$0xff] }
 0x4ee   : > { %3762 = vmatprep.subr.mxu0 %v4581_v0 }
 0x4f4   : > { %v1788_v60 = vpop.xlane.xlu1 %1787 }
 0x4f6   : > { %v4134_v59 = vpop.eup %4133 }
 0x4f7   : > { %v1295_v61 = vmul.f32 %v4134_v59, %v4126_v44 }
 0x4f8   : > { %v1627_v1 = vpop.permute.xlu1 %1626 }
 0x4f9   : > { %3755 = vmatmul.mubr.msk.f32.vlgmr.msra.gmra.mxu0 %vm1210_vm3, %v1295_v61 }
 0x4fa   : > { %v4136_v62 = vpop.eup %4135  ;;  %3763 = vmatpush3.msra.mxu0 %v1462_v55  ;;  %3764 = vmatprep.mubr.msk.f32.mxu0 %vm4582_vm0, %v4581_v0 }
 0x4fb   : > { %3772 = vmatprep.subr.mxu0 %v4581_v0  ;;  %v1460_v63 = vmul.f32 %v4136_v62, %v4128_v46 }
 0x4fd   : > { %3765 = vmatmul.mubr.msk.f32.vlgmr.msra.gmra.mxu0 %vm1210_vm3, %v1460_v63  ;;  %v3609_v63 = vld [vmem:[#allocation16] ss:$0 sm:$0xff] }
 0x4fe   : > { %3773 = vmatpush3.msra.mxu0 %v1627_v1  ;;  %3774 = vmatprep.mubr.msk.f32.mxu0 %vm4582_vm0, %v4581_v0 }
 0x4ff   : > { %3782 = vmatprep.subr.mxu0 %v4581_v0 }
 0x51d   : > { %v1623_v2 = vpop.xlane.xlu0 %1622 }
 0x51e   : > { %4137 = vrcp.f32 %v1623_v2 }
 0x51f   : > { %4139 = vrcp.f32 %v1788_v60 }
 0x521   : > { %v1792_v6 = vpop.permute.xlu0 %1791 }
 0x52b   : > { %v4138_v3 = vpop.eup %4137 }
 0x52c   : > { %v1625_v4 = vmul.f32 %v4138_v3, %v4132_v53  ;;  %v4140_v5 = vpop.eup %4139 }
 0x52d   : > { %v1790_v7 = vmul.f32 %v4140_v5, %v4130_v48 }
 0x52e   : > { %3775 = vmatmul.mubr.msk.f32.vlgmr.msra.gmra.mxu0 %vm1210_vm3, %v1625_v4 }
 0x52f   : > { %3783 = vmatpush3.msra.mxu0 %v1792_v6  ;;  %3784 = vmatprep.mubr.msk.f32.mxu0 %vm4582_vm0, %v4581_v0 }
 0x530   : > { %3798 = vmatprep.subr.mxu0 %v4581_v0 }
 0x532   : > { %3785 = vmatmul.mubr.msk.f32.vlgmr.msra.gmra.mxu0 %vm1210_vm3, %v1790_v7 }
 0x533   : > { %3806 = vmatprep.mubr.msk.f32.mxu0 %vm4582_vm0, %v4581_v0  ;;  %3799 = vmatpush3.msra.mxu0 %v2001_v38 }
 0x534   : > { %3800 = vmatprep.subr.mxu0 %v4581_v0 }
 0x535   : > { %3801 = vmatpush3.msra.mxu0 %v2000_v39 }
 0x536   : > { %3802 = vmatprep.subr.mxu0 %v4581_v0 }
 0x5b9   : > { %v1368_v9 = vpop.f32.mrf.mxu0 }
 0x5bb   : > { %v3756_v11 = vpop.f32.mrf.mxu0 }
 0x5bd   : > { %v1533_v12 = vpop.f32.mrf.mxu0 }
 0x5be   : > { %1868 = vrot.lane.b32.xlu1 %v1533_v12, %s5292_s6  ;;  %s5293_s6 = smov 24  }
 0x5bf   : > { %v3766_v13 = vpop.f32.mrf.mxu0 }
 0x5ee   : > { %v1698_v17 = vpop.f32.mrf.mxu0 }
 0x5ef   : > { %1872 = vrot.lane.b32.xlu0 %v1698_v17, %s5294_s28  ;;  %s5354_s28 = sld [smem:[#allocation39_spill]] }
 0x5f0   : > { %v3776_v18 = vpop.f32.mrf.mxu0 }
 0x5f2   : > { %v1863_v19 = vpop.f32.mrf.mxu0 }
 0x5f3   : > { %1876 = vrot.lane.b32.xlu1 %v1863_v19, %s5293_s6  ;;  %s5353_s6 = sld [smem:[#allocation37_spill]] }
 0x5f4   : > { %v3786_v20 = vpop.f32.mrf.mxu0 }
 0x5f5   : > { %v2205_v12 = vld [vmem:[%s5354_s28 + $0x18] sm:$0xff]  ;;  %v2204_v13 = vld [vmem:[%s5354_s28 + $0x10] sm:$0xff]  ;;  %v2203_v14 = vld [vmem:[%s5354_s28 + $0x8] sm:$0xff] }
 0x5f6   : > { %v2202_v15 = vld [vmem:[%s5354_s28] sm:$0xff]  ;;  %v3611_v20 = vld [vmem:[#allocation17] ss:$0 sm:$0xff] }
 0x5f9   : > { %v2090_v41 = vld [vmem:[%s5353_s6 + $0x38] sm:$0xff]  ;;  %v2089_v42 = vld [vmem:[%s5353_s6 + $0x30] sm:$0xff]  ;;  %v2088_v43 = vld [vmem:[%s5353_s6 + $0x28] sm:$0xff] }
 0x5fa   : > { %v2087_v44 = vld [vmem:[%s5353_s6 + $0x20] sm:$0xff]  ;;  %v2086_v45 = vld [vmem:[%s5353_s6 + $0x18] sm:$0xff]  ;;  %v2085_v55 = vld [vmem:[%s5353_s6 + $0x10] sm:$0xff] }
 0x5fb   : > { %v2084_v56 = vld [vmem:[%s5353_s6 + $0x8] sm:$0xff]  ;;  %v2083_v57 = vld [vmem:[%s5353_s6] sm:$0xff]  ;;  %s4597_s6 = smov [#allocation20]  }
 0x630   : > { %v1869_v21 = vpop.permute.xlu1 %1868 }
 0x631   : > { %v1879_v23 = vsel %vm1210_vm3, %v1368_v9, %v1869_v21 }
 0x661   : > { %v1873_v22 = vpop.permute.xlu0 %1872 }
 0x662   : > { %v1880_v24 = vsel %vm1048_vm1, %v1879_v23, %v1873_v22  ;;  %v3612_v22 = vld [vmem:[#allocation19] ss:$0 sm:$0xff] }
 0x665   : > { %v1877_v25 = vpop.permute.xlu1 %1876 }
 0x666   : > { %v1882_v26 = vsel %vm1881_vm4, %v1880_v24, %v1877_v25  ;;  %v3613_v25 = vld [vmem:[%s5355_s2] ss:$0 sm:$0xff]  ;;  %s5364_s2 = sld [smem:[#allocation45_spill]] }
 0x667   : > { %3796 = vmatmul.mubr.msk.f32.vlgmr.msra.gmra.mxu1 %vm1133_vm2, %v1882_v26 }
 0x668   : > { %3825 = vmatprep.mubr.msk.f32.mxu1 %vm4582_vm0, %v4581_v0  ;;  %3810 = vmatpush3.msra.mxu1 %v2090_v41 }
 0x669   : > { %3811 = vmatprep.subr.mxu1 %v4581_v0 }
 0x66a   : > { %3812 = vmatpush3.msra.mxu1 %v2089_v42 }
 0x66b   : > { %3813 = vmatprep.subr.mxu1 %v4581_v0 }
 0x66c   : > { %3814 = vmatpush3.msra.mxu1 %v2088_v43 }
 0x66d   : > { %3815 = vmatprep.subr.mxu1 %v4581_v0 }
 0x66e   : > { %3816 = vmatpush3.msra.mxu1 %v2087_v44 }
 0x66f   : > { %3817 = vmatprep.subr.mxu1 %v4581_v0 }
 0x670   : > { %3818 = vmatpush3.msra.mxu1 %v2086_v45 }
 0x671   : > { %3819 = vmatprep.subr.mxu1 %v4581_v0 }
 0x672   : > { %3820 = vmatpush3.msra.mxu1 %v2085_v55 }
 0x673   : > { %3821 = vmatprep.subr.mxu1 %v4581_v0 }
 0x674   : > { %3822 = vmatpush3.msra.mxu1 %v2084_v56 }
 0x675   : > { %3823 = vmatprep.subr.mxu1 %v4581_v0 }
 0x676   : > { %3824 = vmatpush3.msra.mxu1 %v2083_v57 }
 0x677   : > { %3849 = vmatprep.subr.mxu1 %v4581_v0 }
 0x727   : > { %v1963_v28 = vpop.f32.mrf.mxu1 }
 0x728   : > { %v1964_v29 = vadd.f32 %v3603_v27, %v1963_v28 }
 0x729   : > { %v3797_v30 = vpop.f32.mrf.mxu1 }
 0x72a   : > { %v1967_v31 = vadd.f32 %v1964_v29, %v4965_v10  ;;  %v1999_v10 = vld [vmem:[%s4661_s24 + $0x8] sm:$0xff] }
 0x72b   : > { %3803 = vmatpush3.msra.mxu0 %v1999_v10 }
 0x72c   : > { %v1970_v32 = vsel %vm1133_vm2, %v1967_v31, 0.0  ;;  %3804 = vmatprep.subr.mxu0 %v4581_v0 }
 0x72d   : > { %1971 = vadd.xlane.f32.xlu0 %v1970_v32  ;;  %3805 = vmatpush3.msra.mxu0 %v1998_v40 }
 0x72e   : > { %3828 = vmatprep.subr.mxu0 %v4581_v0 }
 0x7b6   : > { %v1972_v33 = vpop.xlane.xlu0 %1971 }
 0x7b7   : > { %v1974_v34 = vmul.f32 0.03125, %v1972_v33 }
 0x7b9   : > { %v1975_v35 = vsub.f32 %v1967_v31, %v1974_v34 }
 0x7bb   : > { %v1976_v36 = vmul.f32 %v1975_v35, %v1975_v35 }
 0x7bd   : > { %v1977_v37 = vsel %vm1133_vm2, %v1976_v36, 0.0 }
 0x7be   : > { %1978 = vadd.xlane.f32.xlu1 %v1977_v37 }
 0x847   : > { %v1979_v46 = vpop.xlane.xlu1 %1978 }
 0x848   : > { %v1980_v47 = vmul.f32 0.03125, %v1979_v46 }
 0x84a   : > { %v1981_v48 = vadd.f32 1e-05, %v1980_v47 }
 0x84c   : > { %4141 = vrsqrt.f32 %v1981_v48 }
 0x859   : > { %v4142_v49 = vpop.eup %4141 }
 0x85a   : > { %v1983_v51 = vmul.f32 %v4142_v49, %v1975_v35 }
 0x85c   : > { %v1990_v53 = vmul.f32 %v3605_v50, %v1983_v51 }
 0x85e   : > { %v1997_v54 = vadd.f32 %v3606_v52, %v1990_v53 }
 0x860   : > { %3807 = vmatmul.mubr.msk.f32.vlgmr.msra.gmra.mxu0 %vm1133_vm2, %v1997_v54 }
 0x861   : > { %3836 = vmatprep.mubr.msk.f32.mxu0 %vm4582_vm0, %v4581_v0  ;;  %3829 = vmatpush3.msra.mxu0 %v2205_v12 }
 0x862   : > { %3830 = vmatprep.subr.mxu0 %v4581_v0 }
 0x863   : > { %3831 = vmatpush3.msra.mxu0 %v2204_v13 }
 0x864   : > { %3832 = vmatprep.subr.mxu0 %v4581_v0 }
 0x865   : > { %3833 = vmatpush3.msra.mxu0 %v2203_v14 }
 0x866   : > { %3834 = vmatprep.subr.mxu0 %v4581_v0 }
 0x867   : > { %3835 = vmatpush3.msra.mxu0 %v2202_v15 }
 0x868   : > { %3839 = vmatprep.subr.mxu0 %v4581_v0 }
 0x920   : > { %v2078_v59 = vpop.f32.mrf.mxu0 }
 0x921   : > { %v2079_v60 = vadd.f32 %v3607_v58, %v2078_v59 }
 0x922   : > { %v3808_v61 = vpop.f32.mrf.mxu0 }
 0x923   : > { %v2082_v62 = vmax.f32 %v2079_v60, 0.0 }
 0x925   : > { %3826 = vmatmul.mubr.msk.f32.vlgmr.msra.gmra.mxu1 %vm2098_vm5, %v2082_v62 }
 0x926   : > { %3851 = vmatprep.mubr.msk.f32.mxu1 %vm4582_vm0, %v4581_v0 }
 0x9e5   : > { %v2168_v1 = vpop.f32.mrf.mxu1 }
 0x9e6   : > { %v2169_v2 = vadd.f32 %v3609_v63, %v2168_v1 }
 0x9e7   : > { %v3827_v3 = vpop.f32.mrf.mxu1 }
 0x9e8   : > { %v2172_v4 = vadd.f32 %v2169_v2, %v1997_v54 }
 0x9ea   : > { %v2175_v5 = vsel %vm1133_vm2, %v2172_v4, 0.0 }
 0x9eb   : > { %2176 = vadd.xlane.f32.xlu0 %v2175_v5 }
 0xa74   : > { %v2177_v6 = vpop.xlane.xlu0 %2176 }
 0xa75   : > { %v2178_v7 = vmul.f32 0.03125, %v2177_v6 }
 0xa77   : > { %v2179_v8 = vsub.f32 %v2172_v4, %v2178_v7 }
 0xa79   : > { %v2180_v9 = vmul.f32 %v2179_v8, %v2179_v8 }
 0xa7b   : > { %v2181_v11 = vsel %vm1133_vm2, %v2180_v9, 0.0 }
 0xa7c   : > { %2182 = vadd.xlane.f32.xlu0 %v2181_v11 }
 0xb05   : > { %v2183_v16 = vpop.xlane.xlu0 %2182 }
 0xb06   : > { %v2184_v17 = vmul.f32 0.03125, %v2183_v16 }
 0xb08   : > { %v2185_v18 = vadd.f32 1e-05, %v2184_v17 }
 0xb0a   : > { %4143 = vrsqrt.f32 %v2185_v18 }
 0xb17   : > { %v4144_v19 = vpop.eup %4143 }
 0xb18   : > { %v2187_v21 = vmul.f32 %v4144_v19, %v2179_v8 }
 0xb1a   : > { %v2194_v23 = vmul.f32 %v3611_v20, %v2187_v21 }
 0xb1c   : > { %v5100_v24 = vadd.f32 %v3612_v22, %v2194_v23 }
 0xb1e   : > { %3837 = vmatmul.mubr.msk.f32.vlgmr.msra.gmra.mxu0 %vm1133_vm2, %v5100_v24 }
 0xb1f   : > { %3841 = vmatprep.mubr.msk.f32.mxu0 %vm4582_vm0, %v4581_v0 }
 0xbde   : > { %v2282_v26 = vpop.f32.mrf.mxu0 }
 0xbdf   : > { %v5107_v27 = vadd.f32 %v3613_v25, %v2282_v26 }
 0xbe0   : > { %v3838_v28 = vpop.f32.mrf.mxu0 }
 0xbe1   : > { %2452 = vrot.lane.b32.xlu0 %v5107_v27, %s4586_s22  ;;  %2287 = vrot.lane.b32.xlu1 %v5107_v27, %s4584_s8  ;;  %s5357_s8 = smov 48   ;;  %s5359_s22 = sld [smem:[#allocation41_spill]] }
 0xbe5   : > { %2615 = vrot.lane.b32.xlu0 %v5107_v27, %s4588_s14  ;;  %2450 = vrot.lane.b32.xlu1 %v5107_v27, %s4583_s13  ;;  %s5356_s13 = smov 64   ;;  %s5361_s14 = sld [smem:[#allocation42_spill]] }
 0xbe7   : > { %v2963_v21 = vld [vmem:[%s5359_s22 + $0x18] sm:$0xff]  ;;  %v2961_v28 = vld [vmem:[%s5359_s22 + $0x8] sm:$0xff] }
 0xbe9   : > { %2780 = vrot.lane.b32.xlu0 %v5107_v27, %s4589_s23  ;;  %2617 = vrot.lane.b32.xlu1 %v5107_v27, %s4585_s12  ;;  %s5358_s12 = smov 40   ;;  %s5362_s23 = smov 16  }
 0xbed   : > { %2782 = vrot.lane.b32.xlu1 %v5107_v27, %s4587_s1  ;;  %s5360_s1 = smov 8  }
 0xc53   : > { %v2453_v29 = vpop.permute.xlu0 %2452  ;;  %v2288_v30 = vpop.permute.xlu1 %2287 }
 0xc54   : > { %3840 = vmatpush3.xpose.msk.msra.mxu0 %vm1210_vm3, %v2288_v30  ;;  %3850 = vmatpush3.xpose.msk.msra.mxu1 %vm1210_vm3, %v2453_v29  ;;  %v2960_v29 = vld [vmem:[%s5359_s22] sm:$0xff] }
 0xc55   : > { %3859 = vmatprep.subr.mxu1 %v4581_v0  ;;  %3844 = vmatprep.subr.mxu0 %v4581_v0 }
 0xc57   : > { %3842 = vmatmul.mubr.msk.f32.vlgmr.msra.gmra.mxu0 %vm1210_vm3, %v5107_v27  ;;  %v2451_v31 = vpop.permute.xlu1 %2450  ;;  %v2616_v33 = vpop.permute.xlu0 %2615 }
 0xc58   : > { %3852 = vmatmul.mubr.msk.f32.vlgmr.msra.gmra.mxu1 %vm1210_vm3, %v2451_v31  ;;  %3846 = vmatprep.mubr.msk.f32.mxu0 %vm4582_vm0, %v4581_v0 }
 0xc59   : > { %3861 = vmatprep.mubr.msk.f32.mxu1 %vm4582_vm0, %v4581_v0 }
 0xc5b   : > { %v2618_v32 = vpop.permute.xlu1 %2617  ;;  %v2781_v35 = vpop.permute.xlu0 %2780 }
 0xc5c   : > { %3860 = vmatpush3.xpose.msk.msra.mxu1 %vm1210_vm3, %v2618_v32 }
 0xc5d   : > { %3869 = vmatprep.subr.mxu1 %v4581_v0 }
 0xc5f   : > { %3862 = vmatmul.mubr.msk.f32.vlgmr.msra.gmra.mxu1 %vm1210_vm3, %v2616_v33  ;;  %v2783_v34 = vpop.permute.xlu1 %2782 }
 0xc60   : > { %3870 = vmatpush3.xpose.msk.msra.mxu1 %vm1210_vm3, %v2783_v34  ;;  %3871 = vmatprep.mubr.msk.f32.mxu1 %vm4582_vm0, %v4581_v0 }
 0xc61   : > { %3879 = vmatprep.subr.mxu1 %v4581_v0 }
 0xc63   : > { %3872 = vmatmul.mubr.msk.f32.vlgmr.msra.gmra.mxu1 %vm1210_vm3, %v2781_v35 }
 0xc64   : > { %3887 = vmatprep.mubr.msk.f32.mxu1 %vm4582_vm0, %v4581_v0  ;;  %3880 = vmatpush3.msra.mxu1 %v2963_v21 }
 0xc65   : > { %3881 = vmatprep.subr.mxu1 %v4581_v0 }
 0xd17   : > { %v2359_v36 = vpop.f32.mrf.mxu0 }
 0xd18   : > { %v2524_v37 = vpop.f32.mrf.mxu1  ;;  %v2363_v38 = vsel %vm1210_vm3, %v2359_v36, -inf }
 0xd19   : > { %2364 = vmax.xlane.f32.xlu1 %v2363_v38  ;;  %v3843_v39 = vpop.f32.mrf.mxu0  ;;  %v2528_v10 = vsel %vm1210_vm3, %v2524_v37, -inf }
 0xd1a   : > { %2529 = vmax.xlane.f32.xlu0 %v2528_v10  ;;  %v3853_v40 = vpop.f32.mrf.mxu1  ;;  %v3627_v10 = vld [vmem:[%s5361_s14] ss:$0 sm:$0xff]  ;;  %s5369_s14 = sld [smem:[#allocation31_spill]] }
 0xd1f   : > { %v2689_v41 = vpop.f32.mrf.mxu1 }
 0xd20   : > { %v2693_v42 = vsel %vm1210_vm3, %v2689_v41, -inf }
 0xd21   : > { %2694 = vmax.xlane.f32.xlu0 %v2693_v42  ;;  %v3863_v43 = vpop.f32.mrf.mxu1 }
 0xd23   : > { %v2854_v44 = vpop.f32.mrf.mxu1 }
 0xd24   : > { %v2858_v45 = vsel %vm1210_vm3, %v2854_v44, -inf }
 0xd25   : > { %v3873_v46 = vpop.f32.mrf.mxu1  ;;  %2859 = vmax.xlane.f32.xlu1 %v2858_v45 }
 0xd36   : > { %2539 = vrot.lane.b32.xlu1 %v5107_v27, %s4590_s16  ;;  %s5363_s16 = smov 24  }
 0xda2   : > { %v2365_v47 = vpop.xlane.xlu1 %2364 }
 0xda3   : > { %v2366_v48 = vsub.f32 %v2359_v36, %v2365_v47  ;;  %v2530_v49 = vpop.xlane.xlu0 %2529 }
 0xda4   : > { %v2531_v50 = vsub.f32 %v2524_v37, %v2530_v49 }
 0xda5   : > { %v2367_v51 = vmul.f32 1.442695, %v2366_v48 }
 0xda6   : > { %v2532_v52 = vmul.f32 1.442695, %v2531_v50  ;;  %v3077_v50 = vld [vmem:[%s5364_s2 + $0x18] sm:$0xff] }
 0xda7   : > { %4145 = vpow2.f32 %v2367_v51  ;;  %v3076_v51 = vld [vmem:[%s5364_s2 + $0x10] sm:$0xff] }
 0xda8   : > { %4147 = vpow2.f32 %v2532_v52  ;;  %v3074_v52 = vld [vmem:[%s5364_s2] sm:$0xff] }
 0xdaa   : > { %v2695_v62 = vpop.xlane.xlu0 %2694 }
 0xdab   : > { %v2696_v63 = vsub.f32 %v2689_v41, %v2695_v62 }
 0xdad   : > { %v2697_v1 = vmul.f32 1.442695, %v2696_v63 }
 0xdae   : > { %v2860_v53 = vpop.xlane.xlu1 %2859 }
 0xdaf   : > { %v2861_v54 = vsub.f32 %v2854_v44, %v2860_v53 }
 0xdb1   : > { %v2862_v55 = vmul.f32 1.442695, %v2861_v54 }
 0xdb2   : > { %v2540_v4 = vpop.permute.xlu1 %2539 }
 0xdb3   : > { %4149 = vpow2.f32 %v2862_v55 }
 0xdb4   : > { %v4146_v56 = vpop.eup %4145  ;;  %4151 = vpow2.f32 %v2697_v1 }
 0xdb5   : > { %v4148_v57 = vpop.eup %4147  ;;  %v2369_v58 = vsel %vm1210_vm3, %v4146_v56, 0.0 }
 0xdb6   : > { %2370 = vadd.xlane.f32.xlu0 %v2369_v58  ;;  %v2534_v59 = vsel %vm1210_vm3, %v4148_v57, 0.0 }
 0xdb7   : > { %2535 = vadd.xlane.f32.xlu1 %v2534_v59 }
 0xdc0   : > { %v4150_v60 = vpop.eup %4149 }
 0xdc1   : > { %v2864_v61 = vsel %vm1210_vm3, %v4150_v60, 0.0  ;;  %v4152_v2 = vpop.eup %4151 }
 0xdc2   : > { %2865 = vadd.xlane.f32.xlu1 %v2864_v61  ;;  %v2699_v3 = vsel %vm1210_vm3, %v4152_v2, 0.0 }
 0xdcc   : > { %2374 = vrot.lane.b32.xlu0 %v5107_v27, %s5356_s13  ;;  %s5365_s13 = sld [smem:[#allocation47_spill]] }
 0xdd2   : > { %v3166_v53 = vld [vmem:[%s5365_s13 + $0x38] sm:$0xff]  ;;  %v3165_v54 = vld [vmem:[%s5365_s13 + $0x30] sm:$0xff]  ;;  %v3164_v55 = vld [vmem:[%s5365_s13 + $0x28] sm:$0xff] }
 0xdd3   : > { %2704 = vrot.lane.b32.xlu1 %v5107_v27, %s5357_s8  ;;  %s5366_s8 = sld [smem:[#allocation43_spill]] }
 0xdd9   : > { %v3629_v62 = vld [vmem:[%s5366_s8] ss:$0 sm:$0xff]  ;;  %s5372_s8 = sld [smem:[#allocation49_spill]] }
 0xdeb   : > { %2700 = vadd.xlane.f32.xlu0 %v2699_v3 }
 0xe01   : > { %2869 = vrot.lane.b32.xlu0 %v5107_v27, %s5358_s12  ;;  %v2962_v27 = vld [vmem:[%s5359_s22 + $0x10] sm:$0xff]  ;;  %s5367_s12 = sld [smem:[#allocation44_spill]] }
 0xe02   : > { %3882 = vmatpush3.msra.mxu1 %v2962_v27  ;;  %v3278_v27 = vld [vmem:[%s5369_s14 + $0x8] sm:$0xff] }
 0xe03   : > { %3883 = vmatprep.subr.mxu1 %v4581_v0 }
 0xe04   : > { %3884 = vmatpush3.msra.mxu1 %v2961_v28  ;;  %v3277_v28 = vld [vmem:[%s5369_s14] sm:$0xff] }
 0xe05   : > { %3885 = vmatprep.subr.mxu1 %v4581_v0 }
 0xe06   : > { %3886 = vmatpush3.msra.mxu1 %v2960_v29 }
 0xe07   : > { %3901 = vmatprep.subr.mxu1 %v4581_v0  ;;  %v3630_v1 = vld [vmem:[%s5367_s12] ss:$0 sm:$0xff]  ;;  %s3638_s12 = sshll.u32 %s4774_s18, 4 }
 0xe08   : > { %s5244_s3 = scalar_lea.hbm %s5372_s8, %s3638_s12 }
 0xe3f   : > { %v2371_v5 = vpop.xlane.xlu0 %2370 }
 0xe40   : > { %4153 = vrcp.f32 %v2371_v5  ;;  %v2536_v6 = vpop.xlane.xlu1 %2535  ;;  %v3160_v5 = vld [vmem:[%s5365_s13 + $0x8] sm:$0xff] }
 0xe41   : > { %4155 = vrcp.f32 %v2536_v6  ;;  %v3159_v6 = vld [vmem:[%s5365_s13] sm:$0xff] }
 0xe43   : > { %v2375_v7 = vpop.permute.xlu0 %2374 }
 0xe44   : > { %3845 = vmatpush3.msra.mxu0 %v2375_v7 }
 0xe45   : > { %3854 = vmatprep.subr.mxu0 %v4581_v0 }
 0xe4b   : > { %v2866_v9 = vpop.xlane.xlu1 %2865 }
 0xe4d   : > { %v4154_v8 = vpop.eup %4153 }
 0xe4e   : > { %v2373_v11 = vmul.f32 %v4154_v8, %v4146_v56  ;;  %v4156_v12 = vpop.eup %4155  ;;  %v3163_v56 = vld [vmem:[%s5365_s13 + $0x20] sm:$0xff] }
 0xe4f   : > { %v2538_v13 = vmul.f32 %v4156_v12, %v4148_v57  ;;  %v2705_v14 = vpop.permute.xlu1 %2704  ;;  %v3162_v57 = vld [vmem:[%s5365_s13 + $0x18] sm:$0xff] }
 0xe50   : > { %3847 = vmatmul.mubr.msk.f32.vlgmr.msra.gmra.mxu0 %vm1210_vm3, %v2373_v11 }
 0xe51   : > { %3855 = vmatpush3.msra.mxu0 %v2540_v4  ;;  %3856 = vmatprep.mubr.msk.f32.mxu0 %vm4582_vm0, %v4581_v0  ;;  %v3161_v4 = vld [vmem:[%s5365_s13 + $0x10] sm:$0xff]  ;;  %s4457_s13 = sshll.u32 %s4597_s6, 4  ;;  %s4458_s13 = int_to_ptr.vmem [resolvable:$false] %s4457_s13 }
 0xe52   : > { %3864 = vmatprep.subr.mxu0 %v4581_v0  ;;  %s4459_s18 = scalar_lea.vmem %s4458_s13, 32 }
 0xe54   : > { %3857 = vmatmul.mubr.msk.f32.vlgmr.msra.gmra.mxu0 %vm1210_vm3, %v2538_v13  ;;  %v3633_v13 = vld [vmem:[%s4736_s21] ss:$0 sm:$0xff] }
 0xe55   : > { %3865 = vmatpush3.msra.mxu0 %v2705_v14  ;;  %3866 = vmatprep.mubr.msk.f32.mxu0 %vm4582_vm0, %v4581_v0 }
 0xe56   : > { %3874 = vmatprep.subr.mxu0 %v4581_v0 }
 0xe74   : > { %v2701_v15 = vpop.xlane.xlu0 %2700 }
 0xe75   : > { %4157 = vrcp.f32 %v2701_v15 }
 0xe76   : > { %4159 = vrcp.f32 %v2866_v9 }
 0xe78   : > { %v2870_v19 = vpop.permute.xlu0 %2869 }
 0xe82   : > { %v4158_v16 = vpop.eup %4157 }
 0xe83   : > { %v2703_v17 = vmul.f32 %v4158_v16, %v4152_v2  ;;  %v4160_v18 = vpop.eup %4159 }
 0xe84   : > { %v2868_v20 = vmul.f32 %v4160_v18, %v4150_v60 }
 0xe85   : > { %3867 = vmatmul.mubr.msk.f32.vlgmr.msra.gmra.mxu0 %vm1210_vm3, %v2703_v17 }
 0xe86   : > { %3875 = vmatpush3.msra.mxu0 %v2870_v19  ;;  %3876 = vmatprep.mubr.msk.f32.mxu0 %vm4582_vm0, %v4581_v0 }
 0xe87   : > { %3890 = vmatprep.subr.mxu0 %v4581_v0 }
 0xe89   : > { %3877 = vmatmul.mubr.msk.f32.vlgmr.msra.gmra.mxu0 %vm1210_vm3, %v2868_v20 }
 0xe8a   : > { %3898 = vmatprep.mubr.msk.f32.mxu0 %vm4582_vm0, %v4581_v0  ;;  %3891 = vmatpush3.msra.mxu0 %v3077_v50 }
 0xe8b   : > { %3892 = vmatprep.subr.mxu0 %v4581_v0 }
 0xe8c   : > { %3893 = vmatpush3.msra.mxu0 %v3076_v51 }
 0xe8d   : > { %3894 = vmatprep.subr.mxu0 %v4581_v0 }
 0xf10   : > { %v2446_v22 = vpop.f32.mrf.mxu0 }
 0xf12   : > { %v3848_v23 = vpop.f32.mrf.mxu0 }
 0xf14   : > { %v2611_v25 = vpop.f32.mrf.mxu0 }
 0xf15   : > { %2946 = vrot.lane.b32.xlu1 %v2611_v25, %s5360_s1  ;;  %s5368_s1 = sld [smem:[#allocation46_spill]]  ;;  %v3280_v25 = vld [vmem:[%s5369_s14 + $0x18] sm:$0xff] }
 0xf16   : > { %v3858_v26 = vpop.f32.mrf.mxu0 }
 0xf17   : > { %v3279_v26 = vld [vmem:[%s5369_s14 + $0x10] sm:$0xff] }
 0xf1b   : > { %v3631_v7 = vld [vmem:[%s5368_s1] ss:$0 sm:$0xff]  ;;  %s1043_s1 = scalar_lea.vmem [#allocation20], %s4918_s19 }
 0xf45   : > { %v2776_v30 = vpop.f32.mrf.mxu0 }
 0xf46   : > { %2950 = vrot.lane.b32.xlu0 %v2776_v30, %s5362_s23  ;;  %s5370_s23 = sld [smem:[#allocation48_spill]] }
 0xf47   : > { %v3868_v31 = vpop.f32.mrf.mxu0 }
 0xf49   : > { %v2941_v32 = vpop.f32.mrf.mxu0 }
 0xf4a   : > { %2954 = vrot.lane.b32.xlu1 %v2941_v32, %s5363_s16  ;;  %s5371_s16 = sld [smem:[#allocation32_spill]] }
 0xf4b   : > { %v3878_v33 = vpop.f32.mrf.mxu0 }
 0xf4c   : > { %v3635_v33 = vld [vmem:[%s4741_s17] ss:$0 sm:$0xff] }
 0xf87   : > { %v2947_v34 = vpop.permute.xlu1 %2946 }
 0xf88   : > { %v2957_v36 = vsel %vm1210_vm3, %v2446_v22, %v2947_v34 }
 0xfb8   : > { %v2951_v35 = vpop.permute.xlu0 %2950 }
 0xfb9   : > { %v2958_v37 = vsel %vm1048_vm1, %v2957_v36, %v2951_v35  ;;  %v3636_v35 = vld [vmem:[%s5370_s23] ss:$0 sm:$0xff]  ;;  %s3359_s23 = scalar_lea.sflag [#allocation4], %s4918_s19 }
 0xfbc   : > { %v2955_v38 = vpop.permute.xlu1 %2954 }
 0xfbd   : > { %v2959_v39 = vsel %vm1881_vm4, %v2958_v37, %v2955_v38 }
 0xfbe   : > { %3888 = vmatmul.mubr.msk.f32.vlgmr.msra.gmra.mxu1 %vm1133_vm2, %v2959_v39  ;;  %v3281_v39 = vld [vmem:[%s5371_s16] sm:$0x1] }
 0xfbf   : > { %3917 = vmatprep.mubr.msk.f32.mxu1 %vm4582_vm0, %v4581_v0  ;;  %3902 = vmatpush3.msra.mxu1 %v3166_v53 }
 0xfc0   : > { %3903 = vmatprep.subr.mxu1 %v4581_v0 }
 0xfc1   : > { %3904 = vmatpush3.msra.mxu1 %v3165_v54 }
 0xfc2   : > { %3905 = vmatprep.subr.mxu1 %v4581_v0 }
 0xfc3   : > { %3906 = vmatpush3.msra.mxu1 %v3164_v55 }
 0xfc4   : > { %3907 = vmatprep.subr.mxu1 %v4581_v0 }
 0xfc5   : > { %3908 = vmatpush3.msra.mxu1 %v3163_v56 }
 0xfc6   : > { %3909 = vmatprep.subr.mxu1 %v4581_v0 }
 0xfc7   : > { %3910 = vmatpush3.msra.mxu1 %v3162_v57 }
 0xfc8   : > { %3911 = vmatprep.subr.mxu1 %v4581_v0 }
 0xfc9   : > { %3912 = vmatpush3.msra.mxu1 %v3161_v4 }
 0xfca   : > { %3913 = vmatprep.subr.mxu1 %v4581_v0 }
 0xfcb   : > { %3914 = vmatpush3.msra.mxu1 %v3160_v5 }
 0xfcc   : > { %3915 = vmatprep.subr.mxu1 %v4581_v0 }
 0xfcd   : > { %3916 = vmatpush3.msra.mxu1 %v3159_v6 }
0x107e   : > { %v3040_v40 = vpop.f32.mrf.mxu1 }
0x107f   : > { %v3041_v41 = vadd.f32 %v3627_v10, %v3040_v40 }
0x1080   : > { %v3889_v42 = vpop.f32.mrf.mxu1 }
0x1081   : > { %v3044_v43 = vadd.f32 %v3041_v41, %v5100_v24  ;;  %v3075_v24 = vld [vmem:[%s5364_s2 + $0x8] sm:$0xff]  ;;  %s3371_s2 = sshll.u32 %s1043_s1, 4  ;;  %s3372_s2 = int_to_ptr.vmem [resolvable:$true] %s3371_s2 }
0x1082   : > { %3895 = vmatpush3.msra.mxu0 %v3075_v24  ;;  %s4453_s5 = scalar_lea.vmem %s3372_s2, 16  ;;  %p4460_p6 = scmp.lt.s32.totalorder %s3372_s2, %s4458_s13 }
0x1083   : > { %v3047_v44 = vsel %vm1133_vm2, %v3044_v43, 0.0  ;;  %3896 = vmatprep.subr.mxu0 %v4581_v0  ;;  %p4454_p0 = scmp.ne.s32.totalorder %s3372_s2, %s4453_s5  ;;  %p4461_p1 = scmp.lt.s32.totalorder %s4459_s18, %s4453_s5 }
0x1084   : > { %3048 = vadd.xlane.f32.xlu0 %v3047_v44  ;;  %3897 = vmatpush3.msra.mxu0 %v3074_v52 }
0x1085   : > { %3920 = vmatprep.subr.mxu0 %v4581_v0  ;;  %p4455_p5 = pnand %p4454_p0, %p5373_p2  ;;  %p4462_p4 = por %p4461_p1, %p4460_p6 }
0x1087   : > { %p4456_p3 = pneg %p4455_p5 }
0x1089   : > { %p4463_p7 = pnand %p4462_p4, %p4456_p3 }
0x110d   : > { %v3049_v45 = vpop.xlane.xlu0 %3048 }
0x110e   : > { %v3050_v46 = vmul.f32 0.03125, %v3049_v45 }
0x1110   : > { %v3051_v47 = vsub.f32 %v3044_v43, %v3050_v46 }
0x1112   : > { %v3052_v48 = vmul.f32 %v3051_v47, %v3051_v47 }
0x1114   : > { %v3053_v49 = vsel %vm1133_vm2, %v3052_v48, 0.0 }
0x1115   : > { %3054 = vadd.xlane.f32.xlu1 %v3053_v49 }
0x119e   : > { %v3055_v58 = vpop.xlane.xlu1 %3054 }
0x119f   : > { %v3056_v59 = vmul.f32 0.03125, %v3055_v58 }
0x11a1   : > { %v3057_v60 = vadd.f32 1e-05, %v3056_v59 }
0x11a3   : > { %4161 = vrsqrt.f32 %v3057_v60 }
0x11b0   : > { %v4162_v61 = vpop.eup %4161 }
0x11b1   : > { %v3059_v63 = vmul.f32 %v4162_v61, %v3051_v47 }
0x11b3   : > { %v3066_v2 = vmul.f32 %v3629_v62, %v3059_v63 }
0x11b5   : > { %v3073_v3 = vadd.f32 %v3630_v1, %v3066_v2 }
0x11b7   : > { %3899 = vmatmul.mubr.msk.f32.vlgmr.msra.gmra.mxu0 %vm1133_vm2, %v3073_v3 }
0x11b8   : > { %3928 = vmatprep.mubr.msk.f32.mxu0 %vm4582_vm0, %v4581_v0  ;;  %3921 = vmatpush3.msra.mxu0 %v3280_v25 }
0x11b9   : > { %3922 = vmatprep.subr.mxu0 %v4581_v0 }
0x11ba   : > { %3923 = vmatpush3.msra.mxu0 %v3279_v26 }
0x11bb   : > { %3924 = vmatprep.subr.mxu0 %v4581_v0 }
0x11bc   : > { %3925 = vmatpush3.msra.mxu0 %v3278_v27 }
0x11bd   : > { %3926 = vmatprep.subr.mxu0 %v4581_v0 }
0x11be   : > { %3927 = vmatpush3.msra.mxu0 %v3277_v28 }
0x1277   : > { %v3154_v8 = vpop.f32.mrf.mxu0 }
0x1278   : > { %v3155_v9 = vadd.f32 %v3631_v7, %v3154_v8 }
0x1279   : > { %v3900_v11 = vpop.f32.mrf.mxu0 }
0x127a   : > { %v3158_v12 = vmax.f32 %v3155_v9, 0.0 }
0x127c   : > { %3918 = vmatmul.mubr.msk.f32.vlgmr.msra.gmra.mxu1 %vm2098_vm5, %v3158_v12 }
0x133c   : > { %v3243_v14 = vpop.f32.mrf.mxu1 }
0x133d   : > { %v3244_v15 = vadd.f32 %v3633_v13, %v3243_v14 }
0x133e   : > { %v3919_v16 = vpop.f32.mrf.mxu1 }
0x133f   : > { %v3247_v17 = vadd.f32 %v3244_v15, %v3073_v3 }
0x1341   : > { %v3250_v18 = vsel %vm1133_vm2, %v3247_v17, 0.0 }
0x1342   : > { %3251 = vadd.xlane.f32.xlu0 %v3250_v18 }
0x13cb   : > { %v3252_v19 = vpop.xlane.xlu0 %3251 }
0x13cc   : > { %v3253_v20 = vmul.f32 0.03125, %v3252_v19 }
0x13ce   : > { %v3254_v21 = vsub.f32 %v3247_v17, %v3253_v20 }
0x13d0   : > { %v3255_v22 = vmul.f32 %v3254_v21, %v3254_v21 }
0x13d2   : > { %v3256_v23 = vsel %vm1133_vm2, %v3255_v22, 0.0 }
0x13d3   : > { %3257 = vadd.xlane.f32.xlu0 %v3256_v23 }
0x145c   : > { %v3258_v29 = vpop.xlane.xlu0 %3257 }
0x145d   : > { %v3259_v30 = vmul.f32 0.03125, %v3258_v29 }
0x145f   : > { %v3260_v31 = vadd.f32 1e-05, %v3259_v30 }
0x1461   : > { %4163 = vrsqrt.f32 %v3260_v31 }
0x146e   : > { %v4164_v32 = vpop.eup %4163 }
0x146f   : > { %v3262_v34 = vmul.f32 %v4164_v32, %v3254_v21 }
0x1471   : > { %v3269_v36 = vmul.f32 %v3635_v33, %v3262_v34 }
0x1473   : > { %v3276_v37 = vadd.f32 %v3636_v35, %v3269_v36 }
0x1475   : > { %v3283_v38 = vrot.slane %v3276_v37, 7 }
0x1477   : > { %3929 = vmatmul.mubr.msk.f32.vlgmr.msra.gmra.mxu0 %vm1133_vm2, %v3283_v38 }
0x1537   : > { %v3352_v0 = vpop.f32.mrf.mxu0 }
0x1538   : > { %v3353_v10 = vadd.f32 %v3352_v0, %v3281_v39 }
0x1539   : > { %v3930_v40 = vpop.f32.mrf.mxu0 }
0x153a   : > { %3357 = vst.msk [vmem:[%s1043_s1] sm:$0x1] %vm3356_vm6, %v3353_v10 }
0x153b   : > { %4466 = shalt.err (!%p4463_p7)
}
0x153c   : > { %s4467_s19 = scalar_lea.hbm %s5244_s3, 16  ;;  %s4471_s16 = scalar_lea.hbm %s5372_s8, 32 }
0x153d   : > { %p4468_p8 = scmp.ne.s32.totalorder %s5244_s3, %s4467_s19  ;;  %p4472_p12 = scmp.lt.s32.totalorder %s5244_s3, %s5372_s8 }
0x153e   : > { %p4473_p9 = scmp.lt.s32.totalorder %s4471_s16, %s4467_s19 }
0x153f   : > { %p4469_p10 = pnand %p4468_p8, %p5373_p2 }
0x1540   : > { %p4474_p13 = por %p4473_p9, %p4472_p12 }
0x1541   : > { %p4470_p11 = pneg %p4469_p10 }
0x1543   : > { %p4475_p0 = pnand %p4474_p13, %p4470_p11 }
0x1545   : > { %4478 = shalt.err (!%p4475_p0)
}
0x1546   : > { %3973 = dma.vmem_to_hbm [thread:$0]  (%p5373_p2), %s3372_s2, 16, %s5244_s3, %s3359_s23  }
0x1547 PF: > { %s3383_s5 = sand.u32 1, %s4525_s7   ;;  %p5374_p5 = scmp.ne.s32.totalorder %s5338_s9, 0 }
0x1548   : > { %p5375_p3 = scmp.ge.s32.totalorder %s4537_s15, 2  ;;  %s3384_s6 = scalar_lea.sflag [#allocation4], %s3383_s5 }
0x154a   : > { %p4011_p6 = pnand %p5375_p3, %p5374_p5 }
0x154c   : > { %p4012_p1 = pneg %p4011_p6 }
0x154e   : > { %4520 = dma.done.wait (%p4012_p1), %s3384_s6, 16  }
0x154f   : > { %4522 = vsyncadd (%p4012_p1), %s3384_s6, 4294967280  ;;  %p77_p4 = scmp.ge.s32.totalorder %s4861_s26, 4   ;;  %s5376_s7 = smov %s4529_s10 }
0x1550   : > { %s5377_s10 = smov %s4533_s11  ;;  %s5378_s11 = smov %s4872_s0 }
0x1551   : > { %s5379_s15 = smov %s4861_s26  ;;  %79 = sbr.rel (!%p77_p4) target bundleno = 67 (0x43), region = 250 }
0x1556   :  { %3388 = vsyncpa [#allocation3], 1 }
0x1557   :  { %3390 = vsyncpa [#allocation3 + $0x1], 1 }
0x1558   :  { %3391 = vsyncpa [#allocation6], 1 }
0x1559   :  { %3392 = vsyncpa [#allocation9], 1 }
0x155a   :  { %3393 = vsyncpa [#allocation12], 1 }
0x155b   :  { %3394 = vsyncpa [#allocation15], 1 }
0x155c   :  { %3395 = vsyncpa [#allocation18], 1 }
0x155d   :  { %3396 = vsyncpa [#allocation4], 1 }
0x155e   :  { %3398 = vsyncpa [#allocation4 + $0x1], 1 }

</bundles_post_ra>
